<compile_context>
chip_gen: v6e
topology: v6e:2x2x1
jax: 0.10.0
libtpu: 0.0.40
codegen_flags: <defaults>
</compile_context>

<pallas_src>
from typing import NamedTuple, Optional

import jax
import jax.numpy as jnp
from jax.experimental import pallas as pl
from jax.experimental.pallas import tpu as pltpu


# --------------------------------------------------------------------------- #
# Kernels
# --------------------------------------------------------------------------- #
def _silu_gate_up(x, wgu, inter_dtype):
    """(tm, K) @ (K, 2*th) -> silu(gate) * up, cast to the down-proj dtype."""
    gu = jnp.dot(x, wgu, preferred_element_type=jnp.float32)      # (tm, 2*th)
    th = gu.shape[-1] // 2
    g = gu[:, :th]
    u = gu[:, th:]
    # silu(g) = g * sigmoid(g); sigmoid via ONE tanh -> one EUP op per element.
    sig = 0.5 * jnp.tanh(0.5 * g) + 0.5
    return (g * sig * u).astype(inter_dtype)                      # (tm, th)


def _mlp_kernel_resident(x_ref, wgu_ref, wd_ref, o_ref):
    """n_h == 1: whole hidden dim in one weight tile; grid over seq tiles only."""
    inter = _silu_gate_up(x_ref[...], wgu_ref[0], wd_ref.dtype)
    o_ref[...] = jnp.dot(
        inter, wd_ref[0], preferred_element_type=jnp.float32
    ).astype(o_ref.dtype)


def _mlp_kernel_streamed(x_ref, wgu_ref, wd_ref, o_ref, acc_ref):
    """n_h > 1: hidden tiles streamed on grid axis 1 (the reduction axis)."""
    h = pl.program_id(1)
    last = pl.num_programs(1) - 1

    inter = _silu_gate_up(x_ref[...], wgu_ref[0], wd_ref.dtype)
    part = jnp.dot(inter, wd_ref[0], preferred_element_type=jnp.float32)

    @pl.when(h == 0)
    def _():
        acc_ref[...] = part

    @pl.when(jnp.logical_and(h > 0, h < last))
    def _():
        acc_ref[...] = acc_ref[...] + part

    @pl.when(h == last)            # write output directly: acc + final dot
    def _():
        o_ref[...] = (acc_ref[...] + part).astype(o_ref.dtype)


# --------------------------------------------------------------------------- #
# Planning (tile sizes, padding, VMEM budget)
# --------------------------------------------------------------------------- #
class MLPPlan(NamedTuple):
    S: int
    K: int
    H: int
    S_pad: int
    H_pad: int
    tm: int
    th: int
    n_seq: int
    n_h: int
    vmem_limit_bytes: int


def _round_up(x: int, m: int) -> int:
    return ((x + m - 1) // m) * m


def _cdiv(a: int, b: int) -> int:
    return -(-a // b)


def plan_qwen2_5_vision_mlp(S: int, K: int, H: int, x_dtype, w_dtype,
                            *, tm_target: int = 512,
                            th_max: Optional[int] = None) -> MLPPlan:
    """Pick seq/hidden tiles + padding that fit the per-core VMEM budget."""
    x_isz = jnp.dtype(x_dtype).itemsize
    w_isz = jnp.dtype(w_dtype).itemsize
    o_isz = x_isz

    # Sublane packing: 8 rows (f32), 16 (bf16), 32 (int8/fp8). Use 128-row
    # alignment (MXU / lane friendly) once S is large enough.
    sub = 8 * max(1, 4 // x_isz)
    seq_align = 128 if _round_up(S, sub) >= 128 else sub

    try:
        cap = (pltpu.get_tpu_info().vmem_capacity_bytes * 7) // 8
    except Exception:
        cap = 56 << 20                 # v7x-safe fallback (7/8 of 64 MiB)

    H_pad = _round_up(H, 128)
    m = H_pad // 128
    th_cands = sorted({d * 128 for d in range(1, m + 1) if m % d == 0},
                      reverse=True)
    if th_max is not None:
        th_max = max(128, th_max)
        th_cands = [t for t in th_cands if t <= th_max]

    def vmem_need(tm, th, n_h):
        # Pallas double-buffers every input block by default -> count 2x.
        w_tile = (2 * K * th + th * K) * w_isz        # fused gate|up + down tile
        need = 2 * w_tile
        need += 2 * tm * K * (x_isz + o_isz)          # double-buffered x / out
        if n_h > 1:
            need += tm * K * 4                        # f32 accumulator scratch
        need += tm * 2 * th * 4                       # f32 gate|up product
        need += tm * th * w_isz                       # silu(g)*u intermediate
        need += 2 << 20                               # compiler internal scratch
        return need

    tm_try = max(seq_align,
                 min(_round_up(S, seq_align), _round_up(tm_target, seq_align)))
    chosen = None
    while chosen is None:
        n_seq = _cdiv(S, tm_try)
        if n_seq > 1 and n_seq % 2 == 1:
            n_seq += 1                 # even seq-tile count -> balanced megacore
        tm = max(seq_align, _round_up(_cdiv(S, n_seq), seq_align))
        S_pad = tm * n_seq
        for th in th_cands:
            n_h = H_pad // th
            need = vmem_need(tm, th, n_h)
            if need <= cap:
                chosen = (tm, n_seq, S_pad, th, n_h, need)
                break
        if chosen is None:
            if tm_try <= seq_align:
                raise ValueError(
                    "Qwen2_5_VisionMLP kernel: no tiling fits the VMEM budget "
                    f"(S={S}, K={K}, H={H}, cap={cap} bytes)")
            tm_try = max(seq_align, (tm_try // 2 // seq_align) * seq_align)

    tm, n_seq, S_pad, th, n_h, need = chosen
    vmem_limit = int(min(cap, max(32 << 20, int(need * 1.3) + (8 << 20))))
    return MLPPlan(S=S, K=K, H=H, S_pad=S_pad, H_pad=H_pad, tm=tm, th=th,
                   n_seq=n_seq, n_h=n_h, vmem_limit_bytes=vmem_limit)


# --------------------------------------------------------------------------- #
# Weight fusion (do ONCE at weight-load time, not per forward)
# --------------------------------------------------------------------------- #
def fuse_qwen2_5_vision_mlp_weights(w_gate, w_up, w_down, plan: MLPPlan):
    """Pack weights into per-hidden-tile fused [gate|up] and down blocks."""
    K, H = w_gate.shape
    assert K == plan.K and H == plan.H
    assert w_up.shape == (K, H) and w_down.shape == (H, K)
    if plan.H_pad != H:
        pad = plan.H_pad - H
        w_gate = jnp.pad(w_gate, ((0, 0), (0, pad)))
        w_up = jnp.pad(w_up, ((0, 0), (0, pad)))
        w_down = jnp.pad(w_down, ((0, pad), (0, 0)))
    n_h, th = plan.n_h, plan.th
    wg3 = w_gate.reshape(K, n_h, th).transpose(1, 0, 2)   # (n_h, K, th)
    wu3 = w_up.reshape(K, n_h, th).transpose(1, 0, 2)     # (n_h, K, th)
    wgu = jnp.concatenate([wg3, wu3], axis=2)             # (n_h, K, 2*th)
    wd3 = w_down.reshape(n_h, th, K)                       # (n_h, th, K)
    return wgu, wd3


# --------------------------------------------------------------------------- #
# Forward
# --------------------------------------------------------------------------- #
def qwen2_5_vision_mlp_fused(x, wgu, wd3, plan: MLPPlan):
    """SwiGLU MLP forward from pre-fused weights. x: (S, K) -> (S, K)."""
    S, K = x.shape
    assert S == plan.S and K == plan.K
    assert wgu.shape == (plan.n_h, K, 2 * plan.th)
    assert wd3.shape == (plan.n_h, plan.th, K)

    if plan.S_pad != S:
        x = jnp.pad(x, ((0, plan.S_pad - S), (0, 0)))

    tm, th, n_h, n_seq = plan.tm, plan.th, plan.n_h, plan.n_seq

    if n_h == 1:
        kernel = _mlp_kernel_resident
        grid = (n_seq,)
        in_specs = [
            pl.BlockSpec((tm, K), lambda i: (i, 0)),
            pl.BlockSpec((1, K, 2 * th), lambda i: (0, 0, 0)),
            pl.BlockSpec((1, th, K), lambda i: (0, 0, 0)),
        ]
        out_specs = pl.BlockSpec((tm, K), lambda i: (i, 0))
        scratch = ()
        dims = ("parallel",)
        w_passes = 1
    else:
        kernel = _mlp_kernel_streamed
        grid = (n_seq, n_h)                      # reduction axis (h) is last
        in_specs = [
            pl.BlockSpec((tm, K), lambda i, h: (i, 0)),
            pl.BlockSpec((1, K, 2 * th), lambda i, h: (h, 0, 0)),
            pl.BlockSpec((1, th, K), lambda i, h: (h, 0, 0)),
        ]
        out_specs = pl.BlockSpec((tm, K), lambda i, h: (i, 0))
        scratch = (pltpu.VMEM((tm, K), jnp.float32),)
        dims = ("parallel", "arbitrary")
        w_passes = n_seq                         # weights re-streamed per seq tile

    x_isz = jnp.dtype(x.dtype).itemsize
    w_isz = jnp.dtype(wgu.dtype).itemsize
    cost = pl.CostEstimate(
        flops=6 * plan.S_pad * K * plan.H_pad,               # 3 matmuls
        transcendentals=plan.S_pad * plan.H_pad,             # one tanh / element
        bytes_accessed=(2 * plan.S_pad * K * x_isz
                        + w_passes * 3 * K * plan.H_pad * w_isz),
    )

    out = pl.pallas_call(
        kernel,
        out_shape=jax.ShapeDtypeStruct((plan.S_pad, K), x.dtype),
        grid_spec=pltpu.PrefetchScalarGridSpec(
            num_scalar_prefetch=0,
            grid=grid,
            in_specs=in_specs,
            out_specs=out_specs,
            scratch_shapes=scratch,
        ),
        compiler_params=pltpu.CompilerParams(
            dimension_semantics=dims,
            vmem_limit_bytes=plan.vmem_limit_bytes,
        ),
        cost_estimate=cost,
    )(x, wgu, wd3)

    return out if plan.S_pad == S else out[:S]


def qwen2_5_vision_mlp(x, w_gate, w_up, w_down, *, tm_target=512, th_max=None):
    """One-shot convenience wrapper (plan + fuse + run).

    For production, call plan_qwen2_5_vision_mlp / fuse_qwen2_5_vision_mlp_weights
    once at weight-load time and reuse qwen2_5_vision_mlp_fused per forward so
    the weight re-pack does not sit on the per-call critical path.
    """
    S, K = x.shape
    Kg, H = w_gate.shape
    assert Kg == K and w_up.shape == (K, H) and w_down.shape == (H, K)
    plan = plan_qwen2_5_vision_mlp(S, K, H, x.dtype, w_gate.dtype,
                                   tm_target=tm_target, th_max=th_max)
    wgu, wd3 = fuse_qwen2_5_vision_mlp_weights(w_gate, w_up, w_down, plan)
    return qwen2_5_vision_mlp_fused(x, wgu, wd3, plan)


def _reference(x, w_gate, w_up, w_down):
    g = x @ w_gate
    u = x @ w_up
    return (g * jax.nn.sigmoid(g) * u) @ w_down


if __name__ == "__main__":
    key = jax.random.PRNGKey(0)
    k0, k1, k2, k3 = jax.random.split(key, 4)

    # Small shapes consistent with the module (seq of vision patches,
    # in_features, hidden_features). Deliberately NOT multiples of 128 to
    # exercise the seq/hidden padding paths.
    S, K, H = 200, 128, 320
    x = jax.random.normal(k0, (S, K), dtype=jnp.float32)
    w_gate = jax.random.normal(k1, (K, H), dtype=jnp.float32) * 0.05
    w_up = jax.random.normal(k2, (K, H), dtype=jnp.float32) * 0.05
    w_down = jax.random.normal(k3, (H, K), dtype=jnp.float32) * 0.05

    ref = _reference(x, w_gate, w_up, w_down)

    # Path 1 (default plan): whole hidden dim in one tile -> resident-weight
    # kernel, grid over seq tiles only. Weights fused once, reused.
    plan1 = plan_qwen2_5_vision_mlp(S, K, H, x.dtype, w_gate.dtype)
    wgu1, wd1 = fuse_qwen2_5_vision_mlp_weights(w_gate, w_up, w_down, plan1)
    out1 = jax.block_until_ready(qwen2_5_vision_mlp_fused(x, wgu1, wd1, plan1))
    assert out1.shape == (S, K)
    assert jnp.allclose(out1, ref, atol=2e-3, rtol=2e-3), "mismatch (resident)"

    # Path 2 (forced small tiles): streamed hidden tiles (n_h > 1) + 2 seq
    # tiles, exercising the f32 accumulator / reduction grid axis and the
    # megacore-parallel seq split.
    plan2 = plan_qwen2_5_vision_mlp(S, K, H, x.dtype, w_gate.dtype,
                                    tm_target=128, th_max=128)
    assert plan2.n_h > 1 and plan2.n_seq == 2
    wgu2, wd2 = fuse_qwen2_5_vision_mlp_weights(w_gate, w_up, w_down, plan2)
    out2 = jax.block_until_ready(qwen2_5_vision_mlp_fused(x, wgu2, wd2, plan2))
    assert jnp.allclose(out2, ref, atol=2e-3, rtol=2e-3), "mismatch (streamed)"

    print("KERNEL_OK")
</pallas_src>

<mosaic_0001>
module attributes {stable_mosaic.version = 11 : i64} {
  func.func @_mlp_kernel_resident(%arg0: i32, %arg1: memref<256x128xf32, #tpu.memory_space<vmem>>, %arg2: memref<1x128x768xf32, #tpu.memory_space<vmem>>, %arg3: memref<1x384x128xf32, #tpu.memory_space<vmem>>, %arg4: memref<256x128xf32, #tpu.memory_space<vmem>>) attributes {dimension_semantics = [#tpu.dimension_semantics<parallel>], iteration_bounds = array<i64: 1>, scalar_prefetch = 0 : i64, scratch_operands = 0 : i64, tpu.core_type = #tpu.core_type<tc>, window_params = [{transform_indices = @transform_0, window_bounds = array<i64: 256, 128>}, {pipeline_mode = #tpu.pipeline_mode<synchronous>, transform_indices = @transform_1, window_bounds = array<i64: 1, 128, 768>}, {pipeline_mode = #tpu.pipeline_mode<synchronous>, transform_indices = @transform_2, window_bounds = array<i64: 1, 384, 128>}, {transform_indices = @transform_3, window_bounds = array<i64: 256, 128>}]} {
    %c0 = arith.constant 0 : index
    %c0_0 = arith.constant 0 : index
    %0 = vector.load %arg1[%c0, %c0_0] : memref<256x128xf32, #tpu.memory_space<vmem>>, vector<256x128xf32>
    %c0_1 = arith.constant 0 : index
    %c0_2 = arith.constant 0 : index
    %c0_3 = arith.constant 0 : index
    %1 = vector.load %arg2[%c0_1, %c0_2, %c0_3] : memref<1x128x768xf32, #tpu.memory_space<vmem>>, vector<1x128x768xf32>
    %2 = vector.shape_cast %1 : vector<1x128x768xf32> to vector<128x768xf32>
    %cst = arith.constant dense<0.000000e+00> : vector<256x768xf32>
    %3 = tpu.matmul %0, %2, %cst {dimension_numbers = #tpu.dot_dimension_numbers<[1], [0], [0], [1], [0, 0, 1, 1], [], []>} : vector<256x128xf32>, vector<128x768xf32>, vector<256x768xf32> -> vector<256x768xf32>
    %4 = vector.extract_strided_slice %3 {offsets = [0, 0], sizes = [256, 384], strides = [1, 1]} : vector<256x768xf32> to vector<256x384xf32>
    %5 = vector.extract_strided_slice %3 {offsets = [0, 384], sizes = [256, 384], strides = [1, 1]} : vector<256x768xf32> to vector<256x384xf32>
    %cst_4 = arith.constant 5.000000e-01 : f32
    %6 = vector.broadcast %cst_4 : f32 to vector<256x384xf32>
    %7 = arith.mulf %6, %4 : vector<256x384xf32>
    %8 = math.tanh %7 : vector<256x384xf32>
    %cst_5 = arith.constant 5.000000e-01 : f32
    %9 = vector.broadcast %cst_5 : f32 to vector<256x384xf32>
    %10 = arith.mulf %9, %8 : vector<256x384xf32>
    %cst_6 = arith.constant 5.000000e-01 : f32
    %11 = vector.broadcast %cst_6 : f32 to vector<256x384xf32>
    %12 = arith.addf %10, %11 : vector<256x384xf32>
    %13 = arith.mulf %4, %12 : vector<256x384xf32>
    %14 = arith.mulf %13, %5 : vector<256x384xf32>
    %c0_7 = arith.constant 0 : index
    %c0_8 = arith.constant 0 : index
    %c0_9 = arith.constant 0 : index
    %15 = vector.load %arg3[%c0_7, %c0_8, %c0_9] : memref<1x384x128xf32, #tpu.memory_space<vmem>>, vector<1x384x128xf32>
    %16 = vector.shape_cast %15 : vector<1x384x128xf32> to vector<384x128xf32>
    %cst_10 = arith.constant dense<0.000000e+00> : vector<256x128xf32>
    %17 = tpu.matmul %14, %16, %cst_10 {dimension_numbers = #tpu.dot_dimension_numbers<[1], [0], [0], [1], [0, 0, 1, 1], [], []>} : vector<256x384xf32>, vector<384x128xf32>, vector<256x128xf32> -> vector<256x128xf32>
    %c0_11 = arith.constant 0 : index
    %c0_12 = arith.constant 0 : index
    %18 = vector.load %arg4[%c0_11, %c0_12] : memref<256x128xf32, #tpu.memory_space<vmem>>, vector<256x128xf32>
    tpu.vector_store %arg4[%c0_11, %c0_12], %17 {strides = array<i32>} : memref<256x128xf32, #tpu.memory_space<vmem>>, vector<256x128xf32>,
    return
  }
  func.func @transform_0(%arg0: i32) -> (i32, i32) {
    %c0_i32 = arith.constant 0 : i32
    %c0_i32_0 = arith.constant 0 : i32
    return %arg0, %c0_i32 : i32, i32
  }
  func.func @transform_1(%arg0: i32) -> (i32, i32, i32) {
    %c0_i32 = arith.constant 0 : i32
    %c0_i32_0 = arith.constant 0 : i32
    %c0_i32_1 = arith.constant 0 : i32
    %c0_i32_2 = arith.constant 0 : i32
    return %c0_i32, %c0_i32_0, %c0_i32_1 : i32, i32, i32
  }
  func.func @transform_2(%arg0: i32) -> (i32, i32, i32) {
    %c0_i32 = arith.constant 0 : i32
    %c0_i32_0 = arith.constant 0 : i32
    %c0_i32_1 = arith.constant 0 : i32
    %c0_i32_2 = arith.constant 0 : i32
    return %c0_i32, %c0_i32_0, %c0_i32_1 : i32, i32, i32
  }
  func.func @transform_3(%arg0: i32) -> (i32, i32) {
    %c0_i32 = arith.constant 0 : i32
    %c0_i32_0 = arith.constant 0 : i32
    return %arg0, %c0_i32 : i32, i32
  }
}

</mosaic_0001>

<bundles_post_ra>
// kernel: tpu_custom_call.1
= control target key start
LH: loop header
LB: loop body
LE: loop exit
PB: predicated region body
PF: predicated region fallthrough
CT: control target
= control target key end

     0   :  { %8 = vsyncpa [#allocation3], 0  ;;  %s3437_s0 = inlined_call_operand.hbm [shape: f32[256,128], index: 0, kind: input, shape index: {}]   ;;  %s3438_s1 = inlined_call_operand.hbm [shape: f32[1,128,768], index: 1, kind: input, shape index: {}]   ;;  %s3439_s2 = inlined_call_operand.hbm [shape: f32[1,384,128], index: 2, kind: input, shape index: {}]   ;;  %s3440_s3 = inlined_call_operand.hbm [shape: f32[256,128], index: 3, kind: output, shape index: {}]  }
   0x1   :  { %9 = vsyncpa [#allocation6], 0 }
   0x2   :  { %10 = vsyncpa [#allocation4], 0  ;;  %s2526_s12 = smov [#allocation5]  }
   0x3   :  { %s28_s13 = sshll.u32 %s2526_s12, 4  ;;  %s29_s13 = int_to_ptr.vmem [resolvable:$true] %s28_s13 }
   0x4   :  { %s2448_s14 = scalar_lea.vmem %s29_s13, 12288  ;;  %p2453_p1 = scmp.lt.s32.totalorder %s29_s13, %s29_s13 }
   0x5   :  { %p2449_p0 = scmp.ne.s32.totalorder %s29_s13, %s2448_s14  ;;  %p2454_p2 = scmp.lt.s32.totalorder %s2448_s14, %s2448_s14 }
   0x7   :  { %p2455_p3 = por %p2454_p2, %p2453_p1 }
   0x9   :  { %p2456_p4 = pnand %p2455_p3, %p2449_p0 }
   0xb   :  { %2459 = shalt.err (!%p2456_p4)
}
   0xc   :  { %s2527_s15 = smov 768   ;;  %s2528_s16 = smov 48  }
   0xd   :  { %34 = dma.hbm_to_vmem [thread:$0]  %s3438_s1, 12288, %s29_s13, [#allocation6], %s2527_s15, %s2527_s15, %s2528_s16  }
   0xe   :  { %s2529_s19 = smov [#allocation2]  }
   0xf   :  { %s16_s20 = sshll.u32 %s2529_s19, 4  ;;  %s17_s20 = int_to_ptr.vmem [resolvable:$true] %s16_s20 }
  0x10   :  { %s2468_s21 = scalar_lea.vmem %s17_s20, 4096  ;;  %p2473_p6 = scmp.lt.s32.totalorder %s17_s20, %s17_s20 }
  0x11   :  { %p2469_p5 = scmp.ne.s32.totalorder %s17_s20, %s2468_s21  ;;  %p2474_p7 = scmp.lt.s32.totalorder %s2468_s21, %s2468_s21 }
  0x13   :  { %p2475_p8 = por %p2474_p7, %p2473_p6 }
  0x15   :  { %p2476_p9 = pnand %p2475_p8, %p2469_p5 }
  0x17   :  { %2479 = shalt.err (!%p2476_p9)
}
  0x18   :  { %s2530_s22 = smov 128   ;;  %s2531_s23 = smov 8  }
  0x19   :  { %22 = dma.hbm_to_vmem [thread:$0]  %s3437_s0, 4096, %s17_s20, [#allocation3], %s2530_s22, %s2530_s22, %s2531_s23  }
  0x1a   :  { %s2532_s1 = smov [#allocation7]  }
  0x1b   :  { %s40_s26 = sshll.u32 %s2532_s1, 4  ;;  %s41_s26 = int_to_ptr.vmem [resolvable:$true] %s40_s26 }
  0x1c   :  { %s2488_s27 = scalar_lea.vmem %s41_s26, 6144  ;;  %p2493_p11 = scmp.lt.s32.totalorder %s41_s26, %s41_s26 }
  0x1d   :  { %p2489_p10 = scmp.ne.s32.totalorder %s41_s26, %s2488_s27  ;;  %p2494_p12 = scmp.lt.s32.totalorder %s2488_s27, %s2488_s27 }
  0x1f   :  { %p2495_p13 = por %p2494_p12, %p2493_p11 }
  0x21   :  { %p2496_p0 = pnand %p2495_p13, %p2489_p10 }
  0x23   :  { %2499 = shalt.err (!%p2496_p0)
}
  0x24   :  { %46 = dma.hbm_to_vmem [thread:$0]  %s3439_s2, 6144, %s41_s26, [#allocation6], %s2530_s22, %s2530_s22, %s2531_s23  }
  0x25   :  { %2520 = dma.done.wait [#allocation3], 4096  }
  0x26   :  { %2521 = vsyncadd [#allocation3], 4294963200 }
  0x27   :  { %2522 = dma.done.wait [#allocation6], 18432  }
  0x28   :  { %2523 = vsyncadd [#allocation6], 4294948864  ;;  %v2533_v0 = vmov 0.0   ;;  %v179_v1 = vld [vmem:[#allocation5 + $0x2d8] sm:$0xff]  ;;  %v178_v2 = vld [vmem:[#allocation5 + $0x2d0] sm:$0xff]  ;;  %s2534_s0 = smov [#allocation8]  }
  0x29   :  { %248 = vmatprep.mubr.f32.mxu0 %v2533_v0  ;;  %392 = vmatprep.mubr.f32.mxu1 %v2533_v0  ;;  %v173_v3 = vld [vmem:[#allocation5 + $0x2a8] sm:$0xff]  ;;  %v172_v4 = vld [vmem:[#allocation5 + $0x2a0] sm:$0xff]  ;;  %v167_v5 = vld [vmem:[#allocation5 + $0x278] sm:$0xff]  ;;  %s2066_s2 = sshll.u32 %s2534_s0, 4  ;;  %s2067_s2 = int_to_ptr.vmem [resolvable:$true] %s2066_s2 }
  0x2a   :  { %184 = vmatprep.subr.mxu0 %v179_v1  ;;  %2207 = vmatprep.subr.mxu1 %v179_v1  ;;  %v166_v6 = vld [vmem:[#allocation5 + $0x270] sm:$0xff]  ;;  %v161_v7 = vld [vmem:[#allocation5 + $0x248] sm:$0xff]  ;;  %v160_v8 = vld [vmem:[#allocation5 + $0x240] sm:$0xff]  ;;  %s2500_s30 = scalar_lea.vmem %s2067_s2, 4096  ;;  %p2505_p2 = scmp.lt.s32.totalorder %s2067_s2, %s2067_s2 }
  0x2b   :  { %185 = vmatpush1.msra.mxu0 %v178_v2  ;;  %2223 = vmatpush1.msra.mxu1 %v178_v2  ;;  %v155_v9 = vld [vmem:[#allocation5 + $0x218] sm:$0xff]  ;;  %v154_v10 = vld [vmem:[#allocation5 + $0x210] sm:$0xff]  ;;  %v149_v11 = vld [vmem:[#allocation5 + $0x1e8] sm:$0xff]  ;;  %p2501_p1 = scmp.ne.s32.totalorder %s2067_s2, %s2500_s30  ;;  %p2506_p3 = scmp.lt.s32.totalorder %s2500_s30, %s2500_s30 }
  0x2c   :  { %186 = vmatprep.subr.mxu0 %v173_v3  ;;  %2208 = vmatprep.subr.mxu1 %v173_v3  ;;  %v148_v12 = vld [vmem:[#allocation5 + $0x1e0] sm:$0xff]  ;;  %v143_v13 = vld [vmem:[#allocation5 + $0x1b8] sm:$0xff]  ;;  %v142_v14 = vld [vmem:[#allocation5 + $0x1b0] sm:$0xff] }
  0x2d   :  { %187 = vmatpush1.msra.mxu0 %v172_v4  ;;  %2224 = vmatpush1.msra.mxu1 %v172_v4  ;;  %v137_v15 = vld [vmem:[#allocation5 + $0x188] sm:$0xff]  ;;  %v136_v16 = vld [vmem:[#allocation5 + $0x180] sm:$0xff]  ;;  %v131_v17 = vld [vmem:[#allocation5 + $0x158] sm:$0xff]  ;;  %p2507_p4 = por %p2506_p3, %p2505_p2 }
  0x2e   :  { %188 = vmatprep.subr.mxu0 %v167_v5  ;;  %2209 = vmatprep.subr.mxu1 %v167_v5  ;;  %v130_v18 = vld [vmem:[#allocation5 + $0x150] sm:$0xff]  ;;  %v125_v19 = vld [vmem:[#allocation5 + $0x128] sm:$0xff]  ;;  %v124_v20 = vld [vmem:[#allocation5 + $0x120] sm:$0xff] }
  0x2f   :  { %189 = vmatpush1.msra.mxu0 %v166_v6  ;;  %2225 = vmatpush1.msra.mxu1 %v166_v6  ;;  %v119_v21 = vld [vmem:[#allocation5 + $0xf8] sm:$0xff]  ;;  %v118_v22 = vld [vmem:[#allocation5 + $0xf0] sm:$0xff]  ;;  %v113_v23 = vld [vmem:[#allocation5 + $0xc8] sm:$0xff]  ;;  %p2508_p5 = pnand %p2507_p4, %p2501_p1 }
  0x30   :  { %190 = vmatprep.subr.mxu0 %v161_v7  ;;  %2210 = vmatprep.subr.mxu1 %v161_v7  ;;  %v112_v24 = vld [vmem:[#allocation5 + $0xc0] sm:$0xff]  ;;  %v107_v25 = vld [vmem:[#allocation5 + $0x98] sm:$0xff]  ;;  %v106_v26 = vld [vmem:[#allocation5 + $0x90] sm:$0xff] }
  0x31   :  { %191 = vmatpush1.msra.mxu0 %v160_v8  ;;  %2226 = vmatpush1.msra.mxu1 %v160_v8  ;;  %v101_v27 = vld [vmem:[#allocation5 + $0x68] sm:$0xff]  ;;  %v100_v28 = vld [vmem:[#allocation5 + $0x60] sm:$0xff]  ;;  %v95_v29 = vld [vmem:[#allocation5 + $0x38] sm:$0xff] }
  0x32   :  { %192 = vmatprep.subr.mxu0 %v155_v9  ;;  %2211 = vmatprep.subr.mxu1 %v155_v9  ;;  %v94_v30 = vld [vmem:[#allocation5 + $0x30] sm:$0xff]  ;;  %v89_v31 = vld [vmem:[#allocation5 + $0x8] sm:$0xff]  ;;  %v88_v32 = vld [vmem:[#allocation5] sm:$0xff] }
  0x33   :  { %193 = vmatpush1.msra.mxu0 %v154_v10  ;;  %2227 = vmatpush1.msra.mxu1 %v154_v10  ;;  %v2572_v33 = vld [vmem:[#allocation2] sm:$0xff]  ;;  %v181_v35 = vld [vmem:[#allocation5 + $0x2e8] sm:$0xff]  ;;  %v183_v36 = vld [vmem:[#allocation5 + $0x2f8] sm:$0xff] }
  0x34   :  { %194 = vmatprep.subr.mxu0 %v149_v11  ;;  %2212 = vmatprep.subr.mxu1 %v149_v11  ;;  %v2574_v34 = vld [vmem:[#allocation2 + $0xc0] sm:$0xff]  ;;  %v182_v38 = vld [vmem:[#allocation5 + $0x2f0] sm:$0xff]  ;;  %v175_v39 = vld [vmem:[#allocation5 + $0x2b8] sm:$0xff] }
  0x35   :  { %195 = vmatpush1.msra.mxu0 %v148_v12  ;;  %2228 = vmatpush1.msra.mxu1 %v148_v12  ;;  %v180_v37 = vld [vmem:[#allocation5 + $0x2e0] sm:$0xff]  ;;  %v174_v40 = vld [vmem:[#allocation5 + $0x2b0] sm:$0xff]  ;;  %v2578_v41 = vld [vmem:[#allocation2 + $0x8] sm:$0xff] }
  0x36   :  { %196 = vmatprep.subr.mxu0 %v143_v13  ;;  %2213 = vmatprep.subr.mxu1 %v143_v13  ;;  %v2580_v42 = vld [vmem:[#allocation2 + $0xc8] sm:$0xff]  ;;  %v168_v45 = vld [vmem:[#allocation5 + $0x280] sm:$0xff]  ;;  %v163_v46 = vld [vmem:[#allocation5 + $0x258] sm:$0xff] }
  0x37   :  { %197 = vmatpush1.msra.mxu0 %v142_v14  ;;  %2229 = vmatpush1.msra.mxu1 %v142_v14  ;;  %v169_v43 = vld [vmem:[#allocation5 + $0x288] sm:$0xff]  ;;  %v162_v47 = vld [vmem:[#allocation5 + $0x250] sm:$0xff]  ;;  %v176_v48 = vld [vmem:[#allocation5 + $0x2c0] sm:$0xff] }
  0x38   :  { %198 = vmatprep.subr.mxu0 %v137_v15  ;;  %2214 = vmatprep.subr.mxu1 %v137_v15  ;;  %v177_v44 = vld [vmem:[#allocation5 + $0x2c8] sm:$0xff]  ;;  %v2587_v49 = vld [vmem:[#allocation2 + $0x10] sm:$0xff]  ;;  %v156_v52 = vld [vmem:[#allocation5 + $0x220] sm:$0xff] }
  0x39   :  { %199 = vmatpush1.msra.mxu0 %v136_v16  ;;  %2230 = vmatpush1.msra.mxu1 %v136_v16  ;;  %v2589_v50 = vld [vmem:[#allocation2 + $0xd0] sm:$0xff]  ;;  %v157_v51 = vld [vmem:[#allocation5 + $0x228] sm:$0xff]  ;;  %v151_v53 = vld [vmem:[#allocation5 + $0x1f8] sm:$0xff] }
  0x3a   :  { %200 = vmatprep.subr.mxu0 %v131_v17  ;;  %2215 = vmatprep.subr.mxu1 %v131_v17  ;;  %v171_v54 = vld [vmem:[#allocation5 + $0x298] sm:$0xff]  ;;  %v150_v55 = vld [vmem:[#allocation5 + $0x1f0] sm:$0xff]  ;;  %v145_v58 = vld [vmem:[#allocation5 + $0x1c8] sm:$0xff] }
  0x3b   :  { %201 = vmatpush1.msra.mxu0 %v130_v18  ;;  %2231 = vmatpush1.msra.mxu1 %v130_v18  ;;  %v2595_v56 = vld [vmem:[#allocation2 + $0x18] sm:$0xff]  ;;  %v144_v59 = vld [vmem:[#allocation5 + $0x1c0] sm:$0xff]  ;;  %v170_v60 = vld [vmem:[#allocation5 + $0x290] sm:$0xff] }
  0x3c   :  { %202 = vmatprep.subr.mxu0 %v125_v19  ;;  %2216 = vmatprep.subr.mxu1 %v125_v19  ;;  %v2598_v57 = vld [vmem:[#allocation2 + $0xd8] sm:$0xff]  ;;  %v138_v62 = vld [vmem:[#allocation5 + $0x190] sm:$0xff]  ;;  %v2602_v63 = vld [vmem:[#allocation2 + $0x20] sm:$0xff] }
  0x3d   :  { %203 = vmatpush1.msra.mxu0 %v124_v20  ;;  %2232 = vmatpush1.msra.mxu1 %v124_v20  ;;  %v139_v61 = vld [vmem:[#allocation5 + $0x198] sm:$0xff]  ;;  %v2604_v1 = vld [vmem:[#allocation2 + $0xe0] sm:$0xff]  ;;  %v133_v2 = vld [vmem:[#allocation5 + $0x168] sm:$0xff] }
  0x3e   :  { %204 = vmatprep.subr.mxu0 %v119_v21  ;;  %2217 = vmatprep.subr.mxu1 %v119_v21  ;;  %v165_v3 = vld [vmem:[#allocation5 + $0x268] sm:$0xff]  ;;  %v132_v4 = vld [vmem:[#allocation5 + $0x160] sm:$0xff]  ;;  %v127_v5 = vld [vmem:[#allocation5 + $0x138] sm:$0xff] }
  0x3f   :  { %205 = vmatpush1.msra.mxu0 %v118_v22  ;;  %2233 = vmatpush1.msra.mxu1 %v118_v22  ;;  %v126_v6 = vld [vmem:[#allocation5 + $0x130] sm:$0xff]  ;;  %v164_v7 = vld [vmem:[#allocation5 + $0x260] sm:$0xff]  ;;  %v2611_v8 = vld [vmem:[#allocation2 + $0x28] sm:$0xff] }
  0x40   :  { %206 = vmatprep.subr.mxu0 %v113_v23  ;;  %2218 = vmatprep.subr.mxu1 %v113_v23  ;;  %v2613_v9 = vld [vmem:[#allocation2 + $0xe8] sm:$0xff]  ;;  %v120_v11 = vld [vmem:[#allocation5 + $0x100] sm:$0xff]  ;;  %v115_v12 = vld [vmem:[#allocation5 + $0xd8] sm:$0xff] }
  0x41   :  { %207 = vmatpush1.msra.mxu0 %v112_v24  ;;  %2234 = vmatpush1.msra.mxu1 %v112_v24  ;;  %v121_v10 = vld [vmem:[#allocation5 + $0x108] sm:$0xff]  ;;  %v159_v13 = vld [vmem:[#allocation5 + $0x238] sm:$0xff]  ;;  %v114_v14 = vld [vmem:[#allocation5 + $0xd0] sm:$0xff] }
  0x42   :  { %208 = vmatprep.subr.mxu0 %v107_v25  ;;  %2219 = vmatprep.subr.mxu1 %v107_v25  ;;  %v2619_v15 = vld [vmem:[#allocation2 + $0x30] sm:$0xff]  ;;  %v109_v17 = vld [vmem:[#allocation5 + $0xa8] sm:$0xff]  ;;  %v108_v18 = vld [vmem:[#allocation5 + $0xa0] sm:$0xff] }
  0x43   :  { %209 = vmatpush1.msra.mxu0 %v106_v26  ;;  %2235 = vmatpush1.msra.mxu1 %v106_v26  ;;  %v2622_v16 = vld [vmem:[#allocation2 + $0xf0] sm:$0xff]  ;;  %v103_v20 = vld [vmem:[#allocation5 + $0x78] sm:$0xff]  ;;  %v97_v24 = vld [vmem:[#allocation5 + $0x48] sm:$0xff] }
  0x44   :  { %210 = vmatprep.subr.mxu0 %v101_v27  ;;  %2220 = vmatprep.subr.mxu1 %v101_v27  ;;  %v158_v19 = vld [vmem:[#allocation5 + $0x230] sm:$0xff]  ;;  %v2626_v22 = vld [vmem:[#allocation2 + $0x38] sm:$0xff]  ;;  %v153_v25 = vld [vmem:[#allocation5 + $0x208] sm:$0xff] }
  0x45   :  { %211 = vmatpush1.msra.mxu0 %v100_v28  ;;  %2236 = vmatpush1.msra.mxu1 %v100_v28  ;;  %v102_v21 = vld [vmem:[#allocation5 + $0x70] sm:$0xff]  ;;  %v2628_v23 = vld [vmem:[#allocation2 + $0xf8] sm:$0xff]  ;;  %v96_v26 = vld [vmem:[#allocation5 + $0x40] sm:$0xff] }
  0x46   :  { %212 = vmatprep.subr.mxu0 %v95_v29  ;;  %2221 = vmatprep.subr.mxu1 %v95_v29  ;;  %v91_v27 = vld [vmem:[#allocation5 + $0x18] sm:$0xff]  ;;  %v90_v28 = vld [vmem:[#allocation5 + $0x10] sm:$0xff]  ;;  %v152_v29 = vld [vmem:[#allocation5 + $0x200] sm:$0xff] }
  0x47   :  { %213 = vmatpush1.msra.mxu0 %v94_v30  ;;  %2237 = vmatpush1.msra.mxu1 %v94_v30  ;;  %v2635_v30 = vld [vmem:[#allocation2 + $0x40] sm:$0xff] }
  0x48   :  { %214 = vmatprep.subr.mxu0 %v89_v31  ;;  %2222 = vmatprep.subr.mxu1 %v89_v31  ;;  %v147_v31 = vld [vmem:[#allocation5 + $0x1d8] sm:$0xff] }
  0x49   :  { %215 = vmatpush1.msra.mxu0 %v88_v32  ;;  %2238 = vmatpush1.msra.mxu1 %v88_v32  ;;  %v146_v32 = vld [vmem:[#allocation5 + $0x1d0] sm:$0xff] }
  0x4a   :  { %249 = vmatmul.mubr.f32.vlgmr.msra.gmra.mxu0 %v2572_v33  ;;  %393 = vmatmul.mubr.f32.vlgmr.msra.gmra.mxu1 %v2574_v34 }
  0x4b   :  { %441 = vmatprep.subr.mxu1 %v181_v35  ;;  %698 = vmatprep.subr.mxu0 %v183_v36  ;;  %v2642_v35 = vld [vmem:[#allocation2 + $0x48] sm:$0xff] }
  0x4c   :  { %442 = vmatpush1.msra.mxu1 %v180_v37  ;;  %699 = vmatpush1.msra.mxu0 %v182_v38  ;;  %v141_v36 = vld [vmem:[#allocation5 + $0x1a8] sm:$0xff]  ;;  %v140_v37 = vld [vmem:[#allocation5 + $0x1a0] sm:$0xff]  ;;  %v2649_v38 = vld [vmem:[#allocation2 + $0x50] sm:$0xff] }
  0x4d   :  { %443 = vmatprep.subr.mxu1 %v175_v39  ;;  %254 = vmatprep.mubr.f32.mxu0 %v2533_v0  ;;  %v135_v39 = vld [vmem:[#allocation5 + $0x178] sm:$0xff] }
  0x4e   :  { %398 = vmatprep.mubr.f32.mxu1 %v2533_v0  ;;  %444 = vmatpush1.msra.mxu1 %v174_v40  ;;  %v134_v40 = vld [vmem:[#allocation5 + $0x170] sm:$0xff] }
  0x4f   :  { %255 = vmatmul.mubr.f32.gmra.mxu0 %v2578_v41  ;;  %399 = vmatmul.mubr.f32.gmra.mxu1 %v2580_v42 }
  0x50   :  { %445 = vmatprep.subr.mxu1 %v169_v43  ;;  %700 = vmatprep.subr.mxu0 %v177_v44  ;;  %v1546_v43 = vld [vmem:[#allocation7 + $0x78] sm:$0xff] }
  0x51   :  { %446 = vmatpush1.msra.mxu1 %v168_v45  ;;  %260 = vmatprep.mubr.f32.mxu0 %v2533_v0  ;;  %v2655_v44 = vld [vmem:[#allocation2 + $0x58] sm:$0xff]  ;;  %v129_v45 = vld [vmem:[#allocation5 + $0x148] sm:$0xff] }
  0x52   :  { %447 = vmatprep.subr.mxu1 %v163_v46  ;;  %404 = vmatprep.mubr.f32.mxu1 %v2533_v0  ;;  %v128_v46 = vld [vmem:[#allocation5 + $0x140] sm:$0xff] }
  0x53   :  { %448 = vmatpush1.msra.mxu1 %v162_v47  ;;  %701 = vmatpush1.msra.mxu0 %v176_v48  ;;  %v1545_v47 = vld [vmem:[#allocation7 + $0x70] sm:$0xff]  ;;  %v2662_v48 = vld [vmem:[#allocation2 + $0x60] sm:$0xff] }
  0x54   :  { %261 = vmatmul.mubr.f32.gmra.mxu0 %v2587_v49  ;;  %405 = vmatmul.mubr.f32.gmra.mxu1 %v2589_v50 }
  0x55   :  { %449 = vmatprep.subr.mxu1 %v157_v51  ;;  %266 = vmatprep.mubr.f32.mxu0 %v2533_v0  ;;  %v123_v51 = vld [vmem:[#allocation5 + $0x118] sm:$0xff] }
  0x56   :  { %450 = vmatpush1.msra.mxu1 %v156_v52  ;;  %410 = vmatprep.mubr.f32.mxu1 %v2533_v0  ;;  %v122_v52 = vld [vmem:[#allocation5 + $0x110] sm:$0xff] }
  0x57   :  { %451 = vmatprep.subr.mxu1 %v151_v53  ;;  %702 = vmatprep.subr.mxu0 %v171_v54  ;;  %v1544_v53 = vld [vmem:[#allocation7 + $0x68] sm:$0xff] }
  0x58   :  { %452 = vmatpush1.msra.mxu1 %v150_v55  ;;  %267 = vmatmul.mubr.f32.gmra.mxu0 %v2595_v56  ;;  %v2669_v54 = vld [vmem:[#allocation2 + $0x68] sm:$0xff] }
  0x59   :  { %411 = vmatmul.mubr.f32.gmra.mxu1 %v2598_v57  ;;  %453 = vmatprep.subr.mxu1 %v145_v58  ;;  %v117_v55 = vld [vmem:[#allocation5 + $0xe8] sm:$0xff]  ;;  %v116_v58 = vld [vmem:[#allocation5 + $0xe0] sm:$0xff] }
  0x5a   :  { %454 = vmatpush1.msra.mxu1 %v144_v59  ;;  %703 = vmatpush1.msra.mxu0 %v170_v60  ;;  %v1543_v59 = vld [vmem:[#allocation7 + $0x60] sm:$0xff]  ;;  %v2676_v60 = vld [vmem:[#allocation2 + $0x70] sm:$0xff] }
  0x5b   :  { %455 = vmatprep.subr.mxu1 %v139_v61  ;;  %272 = vmatprep.mubr.f32.mxu0 %v2533_v0  ;;  %v111_v61 = vld [vmem:[#allocation5 + $0xb8] sm:$0xff] }
  0x5c   :  { %416 = vmatprep.mubr.f32.mxu1 %v2533_v0  ;;  %456 = vmatpush1.msra.mxu1 %v138_v62  ;;  %v110_v62 = vld [vmem:[#allocation5 + $0xb0] sm:$0xff] }
  0x5d   :  { %273 = vmatmul.mubr.f32.gmra.mxu0 %v2602_v63  ;;  %417 = vmatmul.mubr.f32.gmra.mxu1 %v2604_v1 }
  0x5e   :  { %457 = vmatprep.subr.mxu1 %v133_v2  ;;  %704 = vmatprep.subr.mxu0 %v165_v3  ;;  %v1542_v2 = vld [vmem:[#allocation7 + $0x58] sm:$0xff] }
  0x5f   :  { %458 = vmatpush1.msra.mxu1 %v132_v4  ;;  %278 = vmatprep.mubr.f32.mxu0 %v2533_v0  ;;  %v2683_v3 = vld [vmem:[#allocation2 + $0x78] sm:$0xff]  ;;  %v105_v4 = vld [vmem:[#allocation5 + $0x88] sm:$0xff] }
  0x60   :  { %459 = vmatprep.subr.mxu1 %v127_v5  ;;  %422 = vmatprep.mubr.f32.mxu1 %v2533_v0  ;;  %v104_v5 = vld [vmem:[#allocation5 + $0x80] sm:$0xff] }
  0x61   :  { %460 = vmatpush1.msra.mxu1 %v126_v6  ;;  %705 = vmatpush1.msra.mxu0 %v164_v7  ;;  %v1541_v6 = vld [vmem:[#allocation7 + $0x50] sm:$0xff]  ;;  %v2690_v7 = vld [vmem:[#allocation2 + $0x80] sm:$0xff] }
  0x62   :  { %279 = vmatmul.mubr.f32.gmra.mxu0 %v2611_v8  ;;  %423 = vmatmul.mubr.f32.gmra.mxu1 %v2613_v9 }
  0x63   :  { %461 = vmatprep.subr.mxu1 %v121_v10  ;;  %284 = vmatprep.mubr.f32.mxu0 %v2533_v0  ;;  %v99_v10 = vld [vmem:[#allocation5 + $0x58] sm:$0xff] }
  0x64   :  { %462 = vmatpush1.msra.mxu1 %v120_v11  ;;  %428 = vmatprep.mubr.f32.mxu1 %v2533_v0  ;;  %v98_v11 = vld [vmem:[#allocation5 + $0x50] sm:$0xff] }
  0x65   :  { %463 = vmatprep.subr.mxu1 %v115_v12  ;;  %706 = vmatprep.subr.mxu0 %v159_v13  ;;  %v2697_v12 = vld [vmem:[#allocation2 + $0x88] sm:$0xff] }
  0x66   :  { %464 = vmatpush1.msra.mxu1 %v114_v14  ;;  %285 = vmatmul.mubr.f32.gmra.mxu0 %v2619_v15  ;;  %v93_v13 = vld [vmem:[#allocation5 + $0x28] sm:$0xff]  ;;  %v92_v14 = vld [vmem:[#allocation5 + $0x20] sm:$0xff] }
  0x67   :  { %429 = vmatmul.mubr.f32.gmra.mxu1 %v2622_v16  ;;  %465 = vmatprep.subr.mxu1 %v109_v17  ;;  %v2703_v17 = vld [vmem:[#allocation2 + $0x90] sm:$0xff] }
  0x68   :  { %466 = vmatpush1.msra.mxu1 %v108_v18  ;;  %707 = vmatpush1.msra.mxu0 %v158_v19  ;;  %v2709_v18 = vld [vmem:[#allocation2 + $0x98] sm:$0xff]  ;;  %v2715_v19 = vld [vmem:[#allocation2 + $0xa0] sm:$0xff] }
  0x69   :  { %467 = vmatprep.subr.mxu1 %v103_v20  ;;  %290 = vmatprep.mubr.f32.mxu0 %v2533_v0  ;;  %v1540_v20 = vld [vmem:[#allocation7 + $0x48] sm:$0xff] }
  0x6a   :  { %434 = vmatprep.mubr.f32.mxu1 %v2533_v0  ;;  %468 = vmatpush1.msra.mxu1 %v102_v21  ;;  %v2721_v21 = vld [vmem:[#allocation2 + $0xa8] sm:$0xff] }
  0x6b   :  { %291 = vmatmul.mubr.f32.gmra.mxu0 %v2626_v22  ;;  %435 = vmatmul.mubr.f32.gmra.mxu1 %v2628_v23 }
  0x6c   :  { %469 = vmatprep.subr.mxu1 %v97_v24  ;;  %708 = vmatprep.subr.mxu0 %v153_v25  ;;  %v2728_v24 = vld [vmem:[#allocation2 + $0xb0] sm:$0xff]  ;;  %v1539_v25 = vld [vmem:[#allocation7 + $0x40] sm:$0xff] }
  0x6d   :  { %470 = vmatpush1.msra.mxu1 %v96_v26  ;;  %296 = vmatprep.mubr.f32.mxu0 %v2533_v0  ;;  %v2735_v26 = vld [vmem:[#allocation2 + $0xb8] sm:$0xff] }
  0x6e   :  { %471 = vmatprep.subr.mxu1 %v91_v27  ;;  %505 = vmatprep.mubr.f32.mxu1 %v2533_v0  ;;  %v1538_v27 = vld [vmem:[#allocation7 + $0x38] sm:$0xff] }
  0x6f   :  { %472 = vmatpush1.msra.mxu1 %v90_v28  ;;  %709 = vmatpush1.msra.mxu0 %v152_v29  ;;  %v1537_v28 = vld [vmem:[#allocation7 + $0x30] sm:$0xff]  ;;  %v1536_v29 = vld [vmem:[#allocation7 + $0x28] sm:$0xff] }
  0x70   :  { %297 = vmatmul.mubr.f32.gmra.mxu0 %v2635_v30  ;;  %506 = vmatmul.mubr.f32.vlgmr.msra.gmra.mxu1 %v2572_v33 }
  0x71   :  { %302 = vmatprep.mubr.f32.mxu0 %v2533_v0  ;;  %511 = vmatprep.mubr.f32.mxu1 %v2533_v0 }
  0x72   :  { %710 = vmatprep.subr.mxu0 %v147_v31  ;;  %1579 = vmatprep.subr.mxu1 %v2533_v0  ;;  %v1578_v31 = vld [vmem:[#allocation7 + $0x178] sm:$0xff] }
  0x73   :  { %711 = vmatpush1.msra.mxu0 %v146_v32  ;;  %1580 = vmatpush1.msra.mxu1 %v1546_v43  ;;  %v1559_v32 = vld [vmem:[#allocation7 + $0xe0] sm:$0xff]  ;;  %v1573_v43 = vld [vmem:[#allocation7 + $0x150] sm:$0xff] }
  0x74   :  { %303 = vmatmul.mubr.f32.gmra.mxu0 %v2642_v35  ;;  %512 = vmatmul.mubr.f32.gmra.mxu1 %v2578_v41 }
  0x75   :  { %308 = vmatprep.mubr.f32.mxu0 %v2533_v0  ;;  %517 = vmatprep.mubr.f32.mxu1 %v2533_v0 }
  0x76   :  { %712 = vmatprep.subr.mxu0 %v141_v36  ;;  %1581 = vmatprep.subr.mxu1 %v2533_v0  ;;  %v1558_v36 = vld [vmem:[#allocation7 + $0xd8] sm:$0xff] }
  0x77   :  { %713 = vmatpush1.msra.mxu0 %v140_v37  ;;  %1582 = vmatpush1.msra.mxu1 %v1545_v47  ;;  %v1575_v37 = vld [vmem:[#allocation7 + $0x160] sm:$0xff]  ;;  %v1553_v47 = vld [vmem:[#allocation7 + $0xb0] sm:$0xff] }
  0x78   :  { %309 = vmatmul.mubr.f32.gmra.mxu0 %v2649_v38  ;;  %518 = vmatmul.mubr.f32.gmra.mxu1 %v2587_v49 }
  0x79   :  { %314 = vmatprep.mubr.f32.mxu0 %v2533_v0  ;;  %523 = vmatprep.mubr.f32.mxu1 %v2533_v0 }
  0x7a   :  { %714 = vmatprep.subr.mxu0 %v135_v39  ;;  %1583 = vmatprep.subr.mxu1 %v2533_v0  ;;  %v1574_v39 = vld [vmem:[#allocation7 + $0x158] sm:$0xff] }
  0x7b   :  { %715 = vmatpush1.msra.mxu0 %v134_v40  ;;  %1584 = vmatpush1.msra.mxu1 %v1544_v53  ;;  %v1556_v40 = vld [vmem:[#allocation7 + $0xc8] sm:$0xff]  ;;  %v1550_v53 = vld [vmem:[#allocation7 + $0x98] sm:$0xff] }
  0x7c   :  { %315 = vmatmul.mubr.f32.gmra.mxu0 %v2655_v44  ;;  %524 = vmatmul.mubr.f32.gmra.mxu1 %v2595_v56 }
  0x7d   :  { %320 = vmatprep.mubr.f32.mxu0 %v2533_v0  ;;  %529 = vmatprep.mubr.f32.mxu1 %v2533_v0 }
  0x7e   :  { %716 = vmatprep.subr.mxu0 %v129_v45  ;;  %1585 = vmatprep.subr.mxu1 %v2533_v0  ;;  %v1554_v45 = vld [vmem:[#allocation7 + $0xb8] sm:$0xff] }
  0x7f   :  { %717 = vmatpush1.msra.mxu0 %v128_v46  ;;  %1586 = vmatpush1.msra.mxu1 %v1543_v59  ;;  %v1572_v46 = vld [vmem:[#allocation7 + $0x148] sm:$0xff] }
  0x80   :  { %321 = vmatmul.mubr.f32.gmra.mxu0 %v2662_v48  ;;  %530 = vmatmul.mubr.f32.gmra.mxu1 %v2602_v63  ;;  %v1568_v59 = vld [vmem:[#allocation7 + $0x128] sm:$0xff] }
  0x81   :  { %326 = vmatprep.mubr.f32.mxu0 %v2533_v0  ;;  %535 = vmatprep.mubr.f32.mxu1 %v2533_v0 }
  0x82   :  { %718 = vmatprep.subr.mxu0 %v123_v51  ;;  %1587 = vmatprep.subr.mxu1 %v2533_v0  ;;  %v1571_v51 = vld [vmem:[#allocation7 + $0x140] sm:$0xff] }
  0x83   :  { %719 = vmatpush1.msra.mxu0 %v122_v52  ;;  %1588 = vmatpush1.msra.mxu1 %v1542_v2  ;;  %v1551_v52 = vld [vmem:[#allocation7 + $0xa0] sm:$0xff]  ;;  %v1566_v2 = vld [vmem:[#allocation7 + $0x118] sm:$0xff] }
  0x84   :  { %327 = vmatmul.mubr.f32.gmra.mxu0 %v2669_v54  ;;  %536 = vmatmul.mubr.f32.gmra.mxu1 %v2611_v8 }
  0x85   :  { %332 = vmatprep.mubr.f32.mxu0 %v2533_v0  ;;  %541 = vmatprep.mubr.f32.mxu1 %v2533_v0 }
  0x86   :  { %720 = vmatprep.subr.mxu0 %v117_v55  ;;  %1589 = vmatprep.subr.mxu1 %v2533_v0  ;;  %v1569_v55 = vld [vmem:[#allocation7 + $0x130] sm:$0xff] }
  0x87   :  { %721 = vmatpush1.msra.mxu0 %v116_v58  ;;  %1590 = vmatpush1.msra.mxu1 %v1541_v6  ;;  %v1549_v58 = vld [vmem:[#allocation7 + $0x90] sm:$0xff] }
  0x88   :  { %333 = vmatmul.mubr.f32.gmra.mxu0 %v2676_v60  ;;  %542 = vmatmul.mubr.f32.gmra.mxu1 %v2619_v15 }
  0x89   :  { %338 = vmatprep.mubr.f32.mxu0 %v2533_v0  ;;  %547 = vmatprep.mubr.f32.mxu1 %v2533_v0 }
  0x8a   :  { %722 = vmatprep.subr.mxu0 %v111_v61  ;;  %1591 = vmatprep.subr.mxu1 %v2533_v0  ;;  %v1567_v61 = vld [vmem:[#allocation7 + $0x120] sm:$0xff] }
  0x8b   :  { %723 = vmatpush1.msra.mxu0 %v110_v62  ;;  %1592 = vmatpush1.msra.mxu1 %v1540_v20  ;;  %v1547_v62 = vld [vmem:[#allocation7 + $0x80] sm:$0xff] }
  0x8c   :  { %339 = vmatmul.mubr.f32.gmra.mxu0 %v2683_v3  ;;  %548 = vmatmul.mubr.f32.gmra.mxu1 %v2626_v22 }
  0x8d   :  { %344 = vmatprep.mubr.f32.mxu0 %v2533_v0  ;;  %553 = vmatprep.mubr.f32.mxu1 %v2533_v0 }
  0x8e   :  { %724 = vmatprep.subr.mxu0 %v105_v4  ;;  %1593 = vmatprep.subr.mxu1 %v2533_v0  ;;  %v1564_v4 = vld [vmem:[#allocation7 + $0x108] sm:$0xff] }
  0x8f   :  { %725 = vmatpush1.msra.mxu0 %v104_v5  ;;  %1594 = vmatpush1.msra.mxu1 %v1539_v25  ;;  %v1563_v5 = vld [vmem:[#allocation7 + $0x100] sm:$0xff] }
  0x90   :  { %345 = vmatmul.mubr.f32.gmra.mxu0 %v2690_v7  ;;  %554 = vmatmul.mubr.f32.gmra.mxu1 %v2635_v30 }
  0x91   :  { %350 = vmatprep.mubr.f32.mxu0 %v2533_v0  ;;  %559 = vmatprep.mubr.f32.mxu1 %v2533_v0 }
  0x92   :  { %726 = vmatprep.subr.mxu0 %v99_v10  ;;  %1595 = vmatprep.subr.mxu1 %v2533_v0 }
  0x93   :  { %727 = vmatpush1.msra.mxu0 %v98_v11  ;;  %1596 = vmatpush1.msra.mxu1 %v1538_v27 }
  0x94   :  { %351 = vmatmul.mubr.f32.gmra.mxu0 %v2697_v12  ;;  %560 = vmatmul.mubr.f32.gmra.mxu1 %v2642_v35 }
  0x95   :  { %356 = vmatprep.mubr.f32.mxu0 %v2533_v0  ;;  %565 = vmatprep.mubr.f32.mxu1 %v2533_v0 }
  0x96   :  { %728 = vmatprep.subr.mxu0 %v93_v13  ;;  %1597 = vmatprep.subr.mxu1 %v2533_v0 }
  0x97   :  { %729 = vmatpush1.msra.mxu0 %v92_v14  ;;  %1598 = vmatpush1.msra.mxu1 %v1537_v28 }
  0x98   :  { %357 = vmatmul.mubr.f32.gmra.mxu0 %v2703_v17  ;;  %566 = vmatmul.mubr.f32.gmra.mxu1 %v2649_v38 }
  0x99   :  { %362 = vmatprep.mubr.f32.mxu0 %v2533_v0  ;;  %571 = vmatprep.mubr.f32.mxu1 %v2533_v0 }
  0x9a   :  { %1599 = vmatprep.subr.mxu1 %v2533_v0  ;;  %2127 = vmatprep.subr.mxu0 %v1578_v31 }
  0x9b   :  { %1600 = vmatpush1.msra.mxu1 %v1536_v29 }
  0x9c   :  { %363 = vmatmul.mubr.f32.gmra.mxu0 %v2709_v18  ;;  %572 = vmatmul.mubr.f32.gmra.mxu1 %v2655_v44 }
  0x9d   :  { %368 = vmatprep.mubr.f32.mxu0 %v2533_v0  ;;  %577 = vmatprep.mubr.f32.mxu1 %v2533_v0 }
  0x9e   :  { %1601 = vmatprep.subr.mxu1 %v2533_v0 }
  0xa0   :  { %369 = vmatmul.mubr.f32.gmra.mxu0 %v2715_v19  ;;  %578 = vmatmul.mubr.f32.gmra.mxu1 %v2662_v48 }
  0xa1   :  { %374 = vmatprep.mubr.f32.mxu0 %v2533_v0  ;;  %583 = vmatprep.mubr.f32.mxu1 %v2533_v0 }
  0xa4   :  { %375 = vmatmul.mubr.f32.gmra.mxu0 %v2721_v21  ;;  %584 = vmatmul.mubr.f32.gmra.mxu1 %v2669_v54 }
  0xa5   :  { %380 = vmatprep.mubr.f32.mxu0 %v2533_v0  ;;  %589 = vmatprep.mubr.f32.mxu1 %v2533_v0 }
  0xa8   :  { %381 = vmatmul.mubr.f32.gmra.mxu0 %v2728_v24  ;;  %590 = vmatmul.mubr.f32.gmra.mxu1 %v2676_v60 }
  0xa9   :  { %386 = vmatprep.mubr.f32.mxu0 %v2533_v0  ;;  %595 = vmatprep.mubr.f32.mxu1 %v2533_v0 }
  0xac   :  { %387 = vmatmul.mubr.f32.gmra.mxu0 %v2735_v26  ;;  %596 = vmatmul.mubr.f32.gmra.mxu1 %v2683_v3 }
  0xad   :  { %601 = vmatprep.mubr.f32.mxu1 %v2533_v0  ;;  %762 = vmatprep.mubr.f32.mxu0 %v2533_v0 }
  0xb0   :  { %602 = vmatmul.mubr.f32.gmra.mxu1 %v2690_v7  ;;  %763 = vmatmul.mubr.f32.vlgmr.msra.gmra.mxu0 %v2572_v33  ;;  %v1535_v33 = vld [vmem:[#allocation7 + $0x20] sm:$0xff] }
  0xb1   :  { %607 = vmatprep.mubr.f32.mxu1 %v2533_v0  ;;  %768 = vmatprep.mubr.f32.mxu0 %v2533_v0 }
  0xb2   :  { %1602 = vmatpush1.msra.mxu1 %v1535_v33  ;;  %2128 = vmatpush3.msra.mxu0 %v1578_v31 }
  0xb3   :  { %1603 = vmatprep.subr.mxu1 %v2533_v0 }
  0xb4   :  { %608 = vmatmul.mubr.f32.gmra.mxu1 %v2697_v12  ;;  %769 = vmatmul.mubr.f32.gmra.mxu0 %v2578_v41  ;;  %v1534_v41 = vld [vmem:[#allocation7 + $0x18] sm:$0xff] }
  0xb5   :  { %613 = vmatprep.mubr.f32.mxu1 %v2533_v0  ;;  %774 = vmatprep.mubr.f32.mxu0 %v2533_v0 }
  0xb6   :  { %1604 = vmatpush1.msra.mxu1 %v1534_v41 }
  0xb7   :  { %1605 = vmatprep.subr.mxu1 %v2533_v0 }
  0xb8   :  { %614 = vmatmul.mubr.f32.gmra.mxu1 %v2703_v17  ;;  %775 = vmatmul.mubr.f32.gmra.mxu0 %v2587_v49  ;;  %v1533_v49 = vld [vmem:[#allocation7 + $0x10] sm:$0xff] }
  0xb9   :  { %619 = vmatprep.mubr.f32.mxu1 %v2533_v0  ;;  %780 = vmatprep.mubr.f32.mxu0 %v2533_v0 }
  0xba   :  { %1606 = vmatpush1.msra.mxu1 %v1533_v49 }
  0xbb   :  { %1607 = vmatprep.subr.mxu1 %v2533_v0 }
  0xbc   :  { %620 = vmatmul.mubr.f32.gmra.mxu1 %v2709_v18  ;;  %781 = vmatmul.mubr.f32.gmra.mxu0 %v2595_v56  ;;  %v1532_v56 = vld [vmem:[#allocation7 + $0x8] sm:$0xff] }
  0xbd   :  { %625 = vmatprep.mubr.f32.mxu1 %v2533_v0  ;;  %786 = vmatprep.mubr.f32.mxu0 %v2533_v0 }
  0xbe   :  { %1608 = vmatpush1.msra.mxu1 %v1532_v56 }
  0xbf   :  { %1609 = vmatprep.subr.mxu1 %v2533_v0 }
  0xc0   :  { %626 = vmatmul.mubr.f32.gmra.mxu1 %v2715_v19  ;;  %787 = vmatmul.mubr.f32.gmra.mxu0 %v2602_v63  ;;  %v1531_v63 = vld [vmem:[#allocation7] sm:$0xff] }
  0xc1   :  { %631 = vmatprep.mubr.f32.mxu1 %v2533_v0  ;;  %792 = vmatprep.mubr.f32.mxu0 %v2533_v0 }
  0xc2   :  { %1610 = vmatpush1.msra.mxu1 %v1531_v63 }
  0xc3   :  { %1611 = vmatprep.subr.mxu1 %v2533_v0 }
  0xc4   :  { %632 = vmatmul.mubr.f32.gmra.mxu1 %v2721_v21  ;;  %793 = vmatmul.mubr.f32.gmra.mxu0 %v2611_v8  ;;  %v1562_v8 = vld [vmem:[#allocation7 + $0xf8] sm:$0xff] }
  0xc5   :  { %637 = vmatprep.mubr.f32.mxu1 %v2533_v0  ;;  %798 = vmatprep.mubr.f32.mxu0 %v2533_v0 }
  0xc6   :  { %1612 = vmatpush2.msra.mxu1 %v1562_v8 }
  0xc7   :  { %1613 = vmatprep.subr.mxu1 %v2533_v0 }
  0xc8   :  { %638 = vmatmul.mubr.f32.gmra.mxu1 %v2728_v24  ;;  %799 = vmatmul.mubr.f32.gmra.mxu0 %v2619_v15  ;;  %v1561_v15 = vld [vmem:[#allocation7 + $0xf0] sm:$0xff] }
  0xc9   :  { %643 = vmatprep.mubr.f32.mxu1 %v2533_v0  ;;  %804 = vmatprep.mubr.f32.mxu0 %v2533_v0 }
  0xca   :  { %1614 = vmatpush2.msra.mxu1 %v1561_v15 }
  0xcb   :  { %1615 = vmatprep.subr.mxu1 %v2533_v0 }
  0xcc   :  { %644 = vmatmul.mubr.f32.gmra.mxu1 %v2735_v26  ;;  %805 = vmatmul.mubr.f32.gmra.mxu0 %v2626_v22  ;;  %v1577_v22 = vld [vmem:[#allocation7 + $0x170] sm:$0xff] }
  0xcd   :  { %649 = vmatprep.mubr.f32.mxu1 %v2533_v0  ;;  %810 = vmatprep.mubr.f32.mxu0 %v2533_v0 }
  0xce   :  { %2129 = vmatprep.subr.mxu0 %v1577_v22 }
  0xcf   :  { %2130 = vmatpush3.msra.mxu0 %v1577_v22 }
  0xd0   :  { %650 = vmatmul.mubr.f32.gmra.mxu1 %v2574_v34  ;;  %811 = vmatmul.mubr.f32.gmra.mxu0 %v2635_v30  ;;  %v1560_v30 = vld [vmem:[#allocation7 + $0xe8] sm:$0xff] }
  0xd1   :  { %655 = vmatprep.mubr.f32.mxu1 %v2533_v0  ;;  %816 = vmatprep.mubr.f32.mxu0 %v2533_v0 }
  0xd2   :  { %1616 = vmatpush2.msra.mxu1 %v1560_v30 }
  0xd3   :  { %1617 = vmatprep.subr.mxu1 %v2533_v0 }
  0xd4   :  { %656 = vmatmul.mubr.f32.gmra.mxu1 %v2580_v42  ;;  %817 = vmatmul.mubr.f32.gmra.mxu0 %v2642_v35  ;;  %v1576_v35 = vld [vmem:[#allocation7 + $0x168] sm:$0xff] }
  0xd5   :  { %661 = vmatprep.mubr.f32.mxu1 %v2533_v0  ;;  %822 = vmatprep.mubr.f32.mxu0 %v2533_v0 }
  0xd6   :  { %1618 = vmatpush2.msra.mxu1 %v1559_v32  ;;  %2131 = vmatprep.subr.mxu0 %v1576_v35 }
  0xd7   :  { %2132 = vmatpush3.msra.mxu0 %v1576_v35  ;;  %1619 = vmatprep.subr.mxu1 %v2533_v0 }
  0xd8   :  { %662 = vmatmul.mubr.f32.gmra.mxu1 %v2589_v50  ;;  %823 = vmatmul.mubr.f32.gmra.mxu0 %v2649_v38  ;;  %v1557_v38 = vld [vmem:[#allocation7 + $0xd0] sm:$0xff] }
  0xd9   :  { %667 = vmatprep.mubr.f32.mxu1 %v2533_v0  ;;  %828 = vmatprep.mubr.f32.mxu0 %v2533_v0 }
  0xda   :  { %1620 = vmatpush2.msra.mxu1 %v1558_v36  ;;  %2133 = vmatprep.subr.mxu0 %v1575_v37 }
  0xdb   :  { %1621 = vmatprep.subr.mxu1 %v2533_v0  ;;  %2134 = vmatpush3.msra.mxu0 %v1575_v37 }
  0xdc   :  { %668 = vmatmul.mubr.f32.gmra.mxu1 %v2598_v57  ;;  %829 = vmatmul.mubr.f32.gmra.mxu0 %v2655_v44  ;;  %v1555_v44 = vld [vmem:[#allocation7 + $0xc0] sm:$0xff] }
  0xdd   :  { %673 = vmatprep.mubr.f32.mxu1 %v2533_v0  ;;  %834 = vmatprep.mubr.f32.mxu0 %v2533_v0 }
  0xde   :  { %1622 = vmatpush2.msra.mxu1 %v1557_v38  ;;  %2135 = vmatprep.subr.mxu0 %v1574_v39 }
  0xdf   :  { %1623 = vmatprep.subr.mxu1 %v2533_v0  ;;  %2136 = vmatpush3.msra.mxu0 %v1574_v39 }
  0xe0   :  { %674 = vmatmul.mubr.f32.gmra.mxu1 %v2604_v1  ;;  %835 = vmatmul.mubr.f32.gmra.mxu0 %v2662_v48  ;;  %v1552_v48 = vld [vmem:[#allocation7 + $0xa8] sm:$0xff] }
  0xe1   :  { %679 = vmatprep.mubr.f32.mxu1 %v2533_v0  ;;  %840 = vmatprep.mubr.f32.mxu0 %v2533_v0 }
  0xe2   :  { %1624 = vmatpush2.msra.mxu1 %v1556_v40  ;;  %2137 = vmatprep.subr.mxu0 %v1573_v43 }
  0xe3   :  { %1625 = vmatprep.subr.mxu1 %v2533_v0  ;;  %2138 = vmatpush3.msra.mxu0 %v1573_v43 }
  0xe4   :  { %680 = vmatmul.mubr.f32.gmra.mxu1 %v2613_v9  ;;  %841 = vmatmul.mubr.f32.gmra.mxu0 %v2669_v54  ;;  %v1570_v54 = vld [vmem:[#allocation7 + $0x138] sm:$0xff] }
  0xe5   :  { %685 = vmatprep.mubr.f32.mxu1 %v2533_v0  ;;  %846 = vmatprep.mubr.f32.mxu0 %v2533_v0 }
  0xe6   :  { %1626 = vmatpush2.msra.mxu1 %v1555_v44  ;;  %2139 = vmatprep.subr.mxu0 %v1572_v46 }
  0xe7   :  { %1627 = vmatprep.subr.mxu1 %v2533_v0  ;;  %2140 = vmatpush3.msra.mxu0 %v1572_v46 }
  0xe8   :  { %686 = vmatmul.mubr.f32.gmra.mxu1 %v2622_v16  ;;  %847 = vmatmul.mubr.f32.gmra.mxu0 %v2676_v60  ;;  %v1548_v60 = vld [vmem:[#allocation7 + $0x88] sm:$0xff] }
  0xe9   :  { %691 = vmatprep.mubr.f32.mxu1 %v2533_v0  ;;  %852 = vmatprep.mubr.f32.mxu0 %v2533_v0 }
  0xea   :  { %1628 = vmatpush2.msra.mxu1 %v1554_v45  ;;  %2141 = vmatprep.subr.mxu0 %v1571_v51 }
  0xeb   :  { %1629 = vmatprep.subr.mxu1 %v2533_v0  ;;  %2142 = vmatpush3.msra.mxu0 %v1571_v51 }
  0xec   :  { %692 = vmatmul.mubr.f32.gmra.mxu1 %v2628_v23  ;;  %853 = vmatmul.mubr.f32.gmra.mxu0 %v2683_v3  ;;  %v1565_v3 = vld [vmem:[#allocation7 + $0x110] sm:$0xff] }
  0xed   :  { %858 = vmatprep.mubr.f32.mxu0 %v2533_v0  ;;  %1630 = vmatpush2.msra.mxu1 %v1553_v47 }
  0xee   :  { %1631 = vmatprep.subr.mxu1 %v2533_v0  ;;  %2143 = vmatprep.subr.mxu0 %v1570_v54 }
  0xef   :  { %1632 = vmatpush2.msra.mxu1 %v1552_v48  ;;  %2144 = vmatpush3.msra.mxu0 %v1570_v54 }
  0xf0   :  { %859 = vmatmul.mubr.f32.gmra.mxu0 %v2690_v7  ;;  %1633 = vmatprep.subr.mxu1 %v2533_v0 }
  0xf1   :  { %864 = vmatprep.mubr.f32.mxu0 %v2533_v0  ;;  %1634 = vmatpush2.msra.mxu1 %v1551_v52 }
  0xf2   :  { %1635 = vmatprep.subr.mxu1 %v2533_v0  ;;  %2145 = vmatprep.subr.mxu0 %v1569_v55 }
  0xf3   :  { %1636 = vmatpush2.msra.mxu1 %v1550_v53  ;;  %2146 = vmatpush3.msra.mxu0 %v1569_v55 }
  0xf4   :  { %865 = vmatmul.mubr.f32.gmra.mxu0 %v2697_v12  ;;  %1637 = vmatprep.subr.mxu1 %v2533_v0 }
  0xf5   :  { %870 = vmatprep.mubr.f32.mxu0 %v2533_v0  ;;  %1638 = vmatpush2.msra.mxu1 %v1549_v58 }
  0xf6   :  { %1639 = vmatprep.subr.mxu1 %v2533_v0  ;;  %2147 = vmatprep.subr.mxu0 %v1568_v59 }
  0xf7   :  { %1640 = vmatpush2.msra.mxu1 %v1548_v60  ;;  %2148 = vmatpush3.msra.mxu0 %v1568_v59 }
  0xf8   :  { %871 = vmatmul.mubr.f32.gmra.mxu0 %v2703_v17  ;;  %1641 = vmatprep.subr.mxu1 %v2533_v0 }
  0xf9   :  { %876 = vmatprep.mubr.f32.mxu0 %v2533_v0  ;;  %2149 = vmatprep.subr.mxu0 %v1567_v61 }
  0xfa   :  { %1642 = vmatpush2.msra.mxu1 %v1547_v62  ;;  %2150 = vmatpush3.msra.mxu0 %v1567_v61 }
  0xfb   :  { %2151 = vmatprep.subr.mxu0 %v1566_v2 }
  0xfc   :  { %877 = vmatmul.mubr.f32.gmra.mxu0 %v2709_v18 }
  0xfd   :  { %882 = vmatprep.mubr.f32.mxu0 %v2533_v0  ;;  %2152 = vmatpush3.msra.mxu0 %v1566_v2 }
  0xfe   :  { %2153 = vmatprep.subr.mxu0 %v1565_v3 }
  0xff   :  { %2154 = vmatpush3.msra.mxu0 %v1565_v3 }
 0x100   :  { %883 = vmatmul.mubr.f32.gmra.mxu0 %v2715_v19  ;;  %2155 = vmatprep.subr.mxu0 %v1564_v4 }
 0x101   :  { %888 = vmatprep.mubr.f32.mxu0 %v2533_v0  ;;  %2156 = vmatpush3.msra.mxu0 %v1564_v4 }
 0x102   :  { %2157 = vmatprep.subr.mxu0 %v1563_v5 }
 0x103   :  { %2158 = vmatpush3.msra.mxu0 %v1563_v5 }
 0x104   :  { %889 = vmatmul.mubr.f32.gmra.mxu0 %v2721_v21 }
 0x105   :  { %894 = vmatprep.mubr.f32.mxu0 %v2533_v0 }
 0x108   :  { %895 = vmatmul.mubr.f32.gmra.mxu0 %v2728_v24 }
 0x109   :  { %900 = vmatprep.mubr.f32.mxu0 %v2533_v0 }
 0x10a   :  { %v2841_v6 = vpop.f32.mrf.mxu0  ;;  %v2843_v7 = vpop.f32.mrf.mxu1 }
 0x10b   :  { %3486 = vst [vmem:[#allocation12_spill] sm:$0xff] %v2843_v7  ;;  %v955_v61 = vmul.f32 0.5, %v2841_v6  ;;  %v1027_v62 = vmul.f32 0.5, %v2843_v7 }
 0x10c   :  { %901 = vmatmul.mubr.f32.gmra.mxu0 %v2735_v26  ;;  %v2846_v10 = vpop.f32.mrf.mxu0  ;;  %v2848_v11 = vpop.f32.mrf.mxu1 }
 0x10d   :  { %3487 = vst [vmem:[#allocation13_spill] sm:$0xff] %v2848_v11  ;;  %906 = vmatprep.mubr.f32.mxu0 %v2533_v0  ;;  %v956_v4 = vmul.f32 0.5, %v2846_v10  ;;  %v1028_v5 = vmul.f32 0.5, %v2848_v11  ;;  %2248 = vtanh.f32 %v955_v61 }
 0x10e   :  { %2250 = vtanh.f32 %v1027_v62 }
 0x10f   :  { %v2851_v12 = vpop.f32.mrf.mxu0  ;;  %v2853_v13 = vpop.f32.mrf.mxu1  ;;  %2252 = vtanh.f32 %v956_v4 }
 0x110   :  { %3488 = vst [vmem:[#allocation14_spill] sm:$0xff] %v2853_v13  ;;  %907 = vmatmul.mubr.f32.gmra.mxu0 %v2574_v34  ;;  %2254 = vtanh.f32 %v1028_v5 }
 0x111   :  { %912 = vmatprep.mubr.f32.mxu0 %v2533_v0  ;;  %v2857_v14 = vpop.f32.mrf.mxu0  ;;  %v2859_v17 = vpop.f32.mrf.mxu1 }
 0x112   :  { %3489 = vst [vmem:[#allocation15_spill] sm:$0xff] %v2859_v17 }
 0x114   :  { %913 = vmatmul.mubr.f32.gmra.mxu0 %v2580_v42  ;;  %v2862_v18 = vpop.f32.mrf.mxu0  ;;  %v2864_v19 = vpop.f32.mrf.mxu1 }
 0x115   :  { %3490 = vst [vmem:[#allocation16_spill] sm:$0xff] %v2864_v19  ;;  %918 = vmatprep.mubr.f32.mxu0 %v2533_v0 }
 0x116   :  { %v2867_v20 = vpop.f32.mrf.mxu0  ;;  %v2869_v21 = vpop.f32.mrf.mxu1 }
 0x117   :  { %3491 = vst [vmem:[#allocation17_spill] sm:$0xff] %v2869_v21  ;;  %v962_v11 = vmul.f32 0.5, %v2867_v20 }
 0x118   :  { %919 = vmatmul.mubr.f32.gmra.mxu0 %v2589_v50  ;;  %v2872_v34 = vpop.f32.mrf.mxu0 }
 0x119   :  { %924 = vmatprep.mubr.f32.mxu0 %v2533_v0  ;;  %v2875_v24 = vpop.f32.mrf.mxu1  ;;  %v964_v61 = vmul.f32 0.5, %v2872_v34 }
 0x11a   :  { %3492 = vst [vmem:[#allocation18_spill] sm:$0xff] %v2875_v24  ;;  %v2877_v25 = vpop.f32.mrf.mxu0 }
 0x11b   :  { %v2879_v42 = vpop.f32.mrf.mxu1  ;;  %v965_v62 = vmul.f32 0.5, %v2877_v25 }
 0x11c   :  { %3493 = vst [vmem:[#allocation19_spill] sm:$0xff] %v2879_v42  ;;  %925 = vmatmul.mubr.f32.gmra.mxu0 %v2598_v57 }
 0x11d   :  { %930 = vmatprep.mubr.f32.mxu0 %v2533_v0  ;;  %v2883_v26 = vpop.f32.mrf.mxu0  ;;  %v2885_v27 = vpop.f32.mrf.mxu1 }
 0x11e   :  { %3494 = vst [vmem:[#allocation20_spill] sm:$0xff] %v2885_v27  ;;  %v967_v4 = vmul.f32 0.5, %v2883_v26 }
 0x11f   :  { %v2887_v28 = vpop.f32.mrf.mxu0  ;;  %v2889_v50 = vpop.f32.mrf.mxu1 }
 0x120   :  { %3495 = vst [vmem:[#allocation21_spill] sm:$0xff] %v2889_v50  ;;  %931 = vmatmul.mubr.f32.gmra.mxu0 %v2604_v1  ;;  %v961_v50 = vmul.f32 0.5, %v2862_v18  ;;  %v968_v5 = vmul.f32 0.5, %v2887_v28 }
 0x121   :  { %936 = vmatprep.mubr.f32.mxu0 %v2533_v0 }
 0x122   :  { %v2893_v29 = vpop.f32.mrf.mxu0  ;;  %v2895_v33 = vpop.f32.mrf.mxu1 }
 0x123   :  { %3496 = vst [vmem:[#allocation22_spill] sm:$0xff] %v2895_v33 }
 0x124   :  { %937 = vmatmul.mubr.f32.gmra.mxu0 %v2613_v9  ;;  %v2898_v57 = vpop.f32.mrf.mxu0  ;;  %v2900_v41 = vpop.f32.mrf.mxu1 }
 0x125   :  { %3497 = vst [vmem:[#allocation23_spill] sm:$0xff] %v2900_v41  ;;  %942 = vmatprep.mubr.f32.mxu0 %v2533_v0 }
 0x126   :  { %v2903_v49 = vpop.f32.mrf.mxu0 }
 0x127   :  { %v2905_v56 = vpop.f32.mrf.mxu1 }
 0x128   :  { %3498 = vst [vmem:[#allocation24_spill] sm:$0xff] %v2905_v56  ;;  %943 = vmatmul.mubr.f32.gmra.mxu0 %v2622_v16  ;;  %v2908_v1 = vpop.f32.mrf.mxu0  ;;  %v958_v56 = vmul.f32 0.5, %v2851_v12 }
 0x129   :  { %3499 = vst [vmem:[#allocation25_spill] sm:$0xff] %v2908_v1  ;;  %v2910_v63 = vpop.f32.mrf.mxu1  ;;  %948 = vmatprep.mubr.f32.mxu0 %v2533_v0 }
 0x12a   :  { %3500 = vst [vmem:[#allocation26_spill] sm:$0xff] %v2910_v63  ;;  %v959_v63 = vmul.f32 0.5, %v2857_v14  ;;  %2256 = vtanh.f32 %v958_v56  ;;  %v970_v56 = vmul.f32 0.5, %v2893_v29 }
 0x12b   :  { %v2913_v31 = vpop.f32.mrf.mxu0  ;;  %v2915_v9 = vpop.f32.mrf.mxu1 }
 0x12c   :  { %3501 = vst [vmem:[#allocation27_spill] sm:$0xff] %v2915_v9  ;;  %949 = vmatmul.mubr.f32.gmra.mxu0 %v2628_v23  ;;  %2258 = vtanh.f32 %v959_v63 }
 0x12d   :  { %v2918_v8 = vpop.f32.mrf.mxu0  ;;  %v2920_v15 = vpop.f32.mrf.mxu1  ;;  %2260 = vtanh.f32 %v961_v50  ;;  %v1030_v50 = vmul.f32 0.5, %v2853_v13 }
 0x12e   :  { %3502 = vst [vmem:[#allocation28_spill] sm:$0xff] %v2918_v8  ;;  %3503 = vst [vmem:[#allocation29_spill] sm:$0xff] %v2920_v15  ;;  %2262 = vtanh.f32 %v962_v11  ;;  %v1031_v11 = vmul.f32 0.5, %v2859_v17  ;;  %v1034_v17 = vmul.f32 0.5, %v2869_v21  ;;  %v1036_v21 = vmul.f32 0.5, %v2875_v24 }
 0x12f   :  { %2264 = vtanh.f32 %v964_v61  ;;  %v1033_v61 = vmul.f32 0.5, %v2864_v19 }
 0x130   :  { %v2922_v22 = vpop.f32.mrf.mxu0  ;;  %v2924_v30 = vpop.f32.mrf.mxu1  ;;  %2266 = vtanh.f32 %v965_v62 }
 0x131   :  { %v957_v63 = vmul.f32 0.5, %v2924_v30  ;;  %2268 = vtanh.f32 %v967_v4  ;;  %v2249_v62 = vpop.eup %2248  ;;  %v973_v4 = vmul.f32 0.5, %v2903_v49 }
 0x132   :  { %v2926_v16 = vpop.f32.mrf.mxu0  ;;  %v2928_v32 = vpop.f32.mrf.mxu1  ;;  %2270 = vtanh.f32 %v968_v5 }
 0x133   :  { %2272 = vtanh.f32 %v970_v56  ;;  %v2251_v13 = vpop.eup %2250 }
 0x134   :  { %v2930_v35 = vpop.f32.mrf.mxu0  ;;  %v2932_v0 = vpop.f32.mrf.mxu1  ;;  %2274 = vtanh.f32 %v957_v63  ;;  %v971_v63 = vmul.f32 0.5, %v2898_v57 }
 0x135   :  { %2276 = vtanh.f32 %v1030_v50  ;;  %v2253_v5 = vpop.eup %2252 }
 0x136   :  { %v2934_v36 = vpop.f32.mrf.mxu0  ;;  %v2936_v37 = vpop.f32.mrf.mxu1  ;;  %2278 = vtanh.f32 %v1031_v11 }
 0x137   :  { %v3034_v56 = vpop.eup %2254  ;;  %2280 = vtanh.f32 %v1033_v61 }
 0x138   :  { %v2938_v23 = vpop.f32.mrf.mxu0  ;;  %v2940_v38 = vpop.f32.mrf.mxu1  ;;  %3528 = vst [vmem:[#allocation54_spill] sm:$0xff] %v3034_v56  ;;  %v976_v56 = vmul.f32 0.5, %v2913_v31 }
 0x13a   :  { %v2942_v39 = vpop.f32.mrf.mxu0  ;;  %v2944_v40 = vpop.f32.mrf.mxu1 }
 0x13c   :  { %v2946_v43 = vpop.f32.mrf.mxu0  ;;  %v2948_v44 = vpop.f32.mrf.mxu1 }
 0x13e   :  { %v2950_v45 = vpop.f32.mrf.mxu0  ;;  %v2952_v46 = vpop.f32.mrf.mxu1 }
 0x140   :  { %v2954_v47 = vpop.f32.mrf.mxu0  ;;  %v2956_v48 = vpop.f32.mrf.mxu1 }
 0x141   :  { %3504 = vst [vmem:[#allocation30_spill] sm:$0xff] %v2956_v48 }
 0x142   :  { %v2958_v51 = vpop.f32.mrf.mxu0  ;;  %v2960_v52 = vpop.f32.mrf.mxu1 }
 0x143   :  { %3505 = vst [vmem:[#allocation31_spill] sm:$0xff] %v2958_v51  ;;  %3506 = vst [vmem:[#allocation32_spill] sm:$0xff] %v2960_v52  ;;  %v974_v52 = vmul.f32 0.5, %v2908_v1  ;;  %v3054_v51 = vmul.f32 0.5, %v2251_v13 }
 0x144   :  { %v2962_v53 = vpop.f32.mrf.mxu0  ;;  %v2964_v54 = vpop.f32.mrf.mxu1 }
 0x145   :  { %3507 = vst [vmem:[#allocation33_spill] sm:$0xff] %v2962_v53  ;;  %3508 = vst [vmem:[#allocation34_spill] sm:$0xff] %v2964_v54 }
 0x146   :  { %v2966_v55 = vpop.f32.mrf.mxu0  ;;  %v2968_v58 = vpop.f32.mrf.mxu1  ;;  %3535 = vst [vmem:[#allocation61_spill] sm:$0xff] %v3054_v51 }
 0x147   :  { %3509 = vst [vmem:[#allocation35_spill] sm:$0xff] %v2966_v55  ;;  %3510 = vst [vmem:[#allocation36_spill] sm:$0xff] %v2968_v58 }
 0x148   :  { %v2970_v59 = vpop.f32.mrf.mxu0  ;;  %v2972_v60 = vpop.f32.mrf.mxu1 }
 0x149   :  { %3511 = vst [vmem:[#allocation37_spill] sm:$0xff] %v2970_v59  ;;  %v1147_v59 = vmul.f32 0.5, %v2249_v62 }
 0x14a   :  { %v2976_v2 = vpop.f32.mrf.mxu0  ;;  %v2978_v3 = vpop.f32.mrf.mxu1 }
 0x14b   :  { %3512 = vst [vmem:[#allocation38_spill] sm:$0xff] %v2976_v2  ;;  %3513 = vst [vmem:[#allocation39_spill] sm:$0xff] %v2978_v3  ;;  %v960_v2 = vmul.f32 0.5, %v2932_v0 }
 0x14c   :  { %v2982_v9 = vpop.f32.mrf.mxu0  ;;  %v2984_v15 = vpop.f32.mrf.mxu1 }
 0x14d   :  { %3514 = vst [vmem:[#allocation40_spill] sm:$0xff] %v2982_v9  ;;  %2282 = vtanh.f32 %v960_v2 }
 0x14e   :  { %v2988_v33 = vpop.f32.mrf.mxu0  ;;  %v2990_v41 = vpop.f32.mrf.mxu1  ;;  %2284 = vtanh.f32 %v973_v4  ;;  %v1148_v4 = vmul.f32 0.5, %v2253_v5 }
 0x14f   :  { %3515 = vst [vmem:[#allocation41_spill] sm:$0xff] %v2988_v33  ;;  %3516 = vst [vmem:[#allocation42_spill] sm:$0xff] %v2990_v41  ;;  %2286 = vtanh.f32 %v1034_v17 }
 0x150   :  { %v2994_v7 = vpop.f32.mrf.mxu0  ;;  %v2996_v27 = vpop.f32.mrf.mxu1 }
 0x151   :  { %3517 = vst [vmem:[#allocation43_spill] sm:$0xff] %v2994_v7 }
 0x152   :  { %v3000_v3 = vpop.f32.mrf.mxu0  ;;  %v3002_v33 = vpop.f32.mrf.mxu1 }
 0x153   :  { %3518 = vst [vmem:[#allocation44_spill] sm:$0xff] %v3000_v3  ;;  %3519 = vst [vmem:[#allocation45_spill] sm:$0xff] %v3002_v33 }
 0x154   :  { %v3006_v41 = vpop.f32.mrf.mxu0  ;;  %v3008_v7 = vpop.f32.mrf.mxu1 }
 0x155   :  { %3520 = vst [vmem:[#allocation46_spill] sm:$0xff] %v3006_v41 }
 0x156   :  { %v3012_v9 = vpop.f32.mrf.mxu0  ;;  %v3014_v3 = vpop.f32.mrf.mxu1 }
 0x157   :  { %3521 = vst [vmem:[#allocation47_spill] sm:$0xff] %v3012_v9  ;;  %3522 = vst [vmem:[#allocation48_spill] sm:$0xff] %v3014_v3 }
 0x158   :  { %v3018_v33 = vpop.f32.mrf.mxu0  ;;  %v3020_v41 = vpop.f32.mrf.mxu1 }
 0x159   :  { %3523 = vst [vmem:[#allocation49_spill] sm:$0xff] %v3018_v33 }
 0x15a   :  { %v3024_v9 = vpop.f32.mrf.mxu0  ;;  %v3026_v3 = vpop.f32.mrf.mxu1 }
 0x15b   :  { %3524 = vst [vmem:[#allocation50_spill] sm:$0xff] %v3024_v9  ;;  %3525 = vst [vmem:[#allocation51_spill] sm:$0xff] %v3026_v3  ;;  %v2257_v9 = vpop.eup %2256  ;;  %v963_v3 = vmul.f32 0.5, %v2940_v38  ;;  %2288 = vtanh.f32 %v971_v63  ;;  %v3057_v63 = vmul.f32 0.5, %v2879_v42 }
 0x15c   :  { %v3030_v33 = vpop.f32.mrf.mxu0  ;;  %v3032_v19 = vpop.f32.mrf.mxu1  ;;  %v1150_v53 = vmul.f32 0.5, %v2257_v9 }
 0x15d   :  { %3526 = vst [vmem:[#allocation52_spill] sm:$0xff] %v3030_v33  ;;  %3527 = vst [vmem:[#allocation53_spill] sm:$0xff] %v3032_v19  ;;  %v2259_v11 = vpop.eup %2258  ;;  %2290 = vtanh.f32 %v963_v3  ;;  %v1243_v19 = vadd.f32 0.5, %v1147_v59  ;;  %v977_v3 = vmul.f32 0.5, %v2918_v8  ;;  %v969_v59 = vmul.f32 0.5, %v2956_v48 }
 0x15e   :  { %v3038_v50 = vpop.f32.mrf.mxu0  ;;  %v3040_v58 = vpop.f32.mrf.mxu1  ;;  %3536 = vst [vmem:[#allocation62_spill] sm:$0xff] %v3057_v63  ;;  %v1151_v9 = vmul.f32 0.5, %v2259_v11  ;;  %v1246_v8 = vadd.f32 0.5, %v1150_v53 }
 0x15f   :  { %3529 = vst [vmem:[#allocation55_spill] sm:$0xff] %v3038_v50  ;;  %3530 = vst [vmem:[#allocation56_spill] sm:$0xff] %v3040_v58  ;;  %v2261_v33 = vpop.eup %2260  ;;  %v966_v58 = vmul.f32 0.5, %v2948_v44  ;;  %2292 = vtanh.f32 %v1036_v21 }
 0x160   :  { %v3044_v61 = vpop.f32.mrf.mxu0  ;;  %v3046_v55 = vpop.f32.mrf.mxu1 }
 0x161   :  { %3531 = vst [vmem:[#allocation57_spill] sm:$0xff] %v3044_v61  ;;  %3532 = vst [vmem:[#allocation58_spill] sm:$0xff] %v3046_v55  ;;  %v2263_v2 = vpop.eup %2262  ;;  %2294 = vtanh.f32 %v976_v56  ;;  %v1244_v56 = vadd.f32 0.5, %v1148_v4 }
 0x162   :  { %v2265_v50 = vpop.eup %2264  ;;  %v3050_v62 = vpop.f32.mrf.mxu0  ;;  %2296 = vtanh.f32 %v974_v52  ;;  %v1154_v51 = vmul.f32 0.5, %v2263_v2 }
 0x163   :  { %3533 = vst [vmem:[#allocation59_spill] sm:$0xff] %v3050_v62  ;;  %v3052_v24 = vpop.f32.mrf.mxu1  ;;  %v2267_v17 = vpop.eup %2266  ;;  %v1156_v5 = vmul.f32 0.5, %v2265_v50  ;;  %2298 = vtanh.f32 %v966_v58  ;;  %v972_v50 = vmul.f32 0.5, %v2964_v54 }
 0x164   :  { %3534 = vst [vmem:[#allocation60_spill] sm:$0xff] %v3052_v24  ;;  %v2269_v61 = vpop.eup %2268  ;;  %v3060_v55 = vpop.f32.mrf.mxu0  ;;  %v1153_v24 = vmul.f32 0.5, %v2261_v33  ;;  %v1157_v33 = vmul.f32 0.5, %v2267_v17  ;;  %2300 = vtanh.f32 %v977_v3  ;;  %v1340_v3 = vmul.f32 %v1244_v56, %v2846_v10 }
 0x165   :  { %3537 = vst [vmem:[#allocation63_spill] sm:$0xff] %v3060_v55  ;;  %v3062_v1 = vpop.f32.mrf.mxu1  ;;  %v2271_v62 = vpop.eup %2270  ;;  %v1339_v55 = vmul.f32 %v1243_v19, %v2841_v6  ;;  %v1159_v48 = vmul.f32 0.5, %v2269_v61  ;;  %2302 = vtanh.f32 %v969_v59  ;;  %v1247_v6 = vadd.f32 0.5, %v1151_v9 }
 0x166   :  { %3538 = vst [vmem:[#allocation64_spill] sm:$0xff] %v3062_v1  ;;  %v2273_v21 = vpop.eup %2272  ;;  %v3065_v13 = vpop.f32.mrf.mxu0  ;;  %v979_v1 = vmul.f32 0.5, %v2922_v22  ;;  %v1249_v2 = vadd.f32 0.5, %v1153_v24  ;;  %v1252_v53 = vadd.f32 0.5, %v1156_v5  ;;  %v980_v24 = vmul.f32 0.5, %v2926_v16 }
 0x167   :  { %3539 = vst [vmem:[#allocation65_spill] sm:$0xff] %v3065_v13  ;;  %v3067_v42 = vpop.f32.mrf.mxu1  ;;  %v2275_v63 = vpop.eup %2274  ;;  %v1162_v13 = vmul.f32 0.5, %v2273_v21  ;;  %v1253_v21 = vadd.f32 0.5, %v1157_v33  ;;  %v1255_v9 = vadd.f32 0.5, %v1159_v48  ;;  %v975_v5 = vmul.f32 0.5, %v2972_v60 }
 0x168   :  { %3540 = vst [vmem:[#allocation66_spill] sm:$0xff] %v3067_v42  ;;  %v3071_v52 = vpop.eup %2276  ;;  %v3074_v58 = vpop.f32.mrf.mxu0  ;;  %v1160_v42 = vmul.f32 0.5, %v2271_v62  ;;  %v1149_v17 = vmul.f32 0.5, %v2275_v63  ;;  %v1342_v62 = vmul.f32 %v1246_v8, %v2851_v12  ;;  %2304 = vtanh.f32 %v979_v1 }
 0x169   :  { %3541 = vst [vmem:[#allocation67_spill] sm:$0xff] %v3071_v52  ;;  %3542 = vst [vmem:[#allocation68_spill] sm:$0xff] %v3074_v58  ;;  %v3076_v11 = vpop.f32.mrf.mxu1  ;;  %v3078_v4 = vpop.eup %2278  ;;  %v1250_v58 = vadd.f32 0.5, %v1154_v51  ;;  %2306 = vtanh.f32 %v972_v50  ;;  %v3097_v10 = vmul.f32 %v1249_v2, %v2862_v18  ;;  %v1258_v12 = vadd.f32 0.5, %v1162_v13 }
 0x16a   :  { %3543 = vst [vmem:[#allocation69_spill] sm:$0xff] %v3078_v4  ;;  %v3080_v19 = vpop.eup %2280  ;;  %v3082_v52 = vpop.f32.mrf.mxu0  ;;  %v1256_v4 = vadd.f32 0.5, %v1160_v42  ;;  %v982_v1 = vmul.f32 0.5, %v2930_v35  ;;  %v1343_v8 = vmul.f32 %v1247_v6, %v2857_v14  ;;  %v3102_v48 = vmul.f32 %v1252_v53, %v2872_v34 }
 0x16b   :  { %3544 = vst [vmem:[#allocation70_spill] sm:$0xff] %v3080_v19  ;;  %v3084_v61 = vpop.f32.mrf.mxu1  ;;  %v2283_v54 = vpop.eup %2282  ;;  %v1245_v56 = vadd.f32 0.5, %v1149_v17  ;;  %v3109_v42 = vmul.f32 %v1250_v58, %v2867_v20  ;;  %2308 = vtanh.f32 %v980_v24  ;;  %v983_v13 = vmul.f32 0.5, %v2934_v36 }
 0x16c   :  { %3545 = vst [vmem:[#allocation71_spill] sm:$0xff] %v3084_v61  ;;  %v2285_v59 = vpop.eup %2284  ;;  %v3090_v63 = vpop.f32.mrf.mxu0  ;;  %v1152_v33 = vmul.f32 0.5, %v2283_v54  ;;  %v3113_v14 = vmul.f32 %v1253_v21, %v2877_v25  ;;  %v3118_v34 = vmul.f32 %v1255_v9, %v2883_v26  ;;  %v1435_v54 = vmul.f32 %v1339_v55, %v2928_v32 }
 0x16d   :  { %3546 = vst [vmem:[#allocation72_spill] sm:$0xff] %v3090_v63  ;;  %v3092_v19 = vpop.f32.mrf.mxu1  ;;  %v3094_v61 = vpop.eup %2286  ;;  %v1165_v2 = vmul.f32 0.5, %v2285_v59  ;;  %2310 = vtanh.f32 %v975_v5  ;;  %v3124_v58 = vmul.f32 %v1256_v4, %v2887_v28  ;;  %v3127_v24 = vmul.f32 %v1258_v12, %v2893_v29 }
 0x16e   :  { %3547 = vst [vmem:[#allocation73_spill] sm:$0xff] %v3094_v61  ;;  %v2289_v51 = vpop.eup %2288  ;;  %v3104_v50 = vpop.f32.mrf.mxu0  ;;  %2312 = vtanh.f32 %v982_v1  ;;  %v978_v25 = vmul.f32 0.5, %v2984_v15  ;;  %v1341_v26 = vmul.f32 %v1245_v56, %v2924_v30  ;;  %v1248_v9 = vadd.f32 0.5, %v1152_v33 }
 0x16f   :  { %3548 = vst [vmem:[#allocation74_spill] sm:$0xff] %v3104_v50  ;;  %v3106_v63 = vpop.f32.mrf.mxu1  ;;  %v2291_v18 = vpop.eup %2290  ;;  %v1163_v21 = vmul.f32 0.5, %v2289_v51  ;;  %v985_v32 = vmul.f32 0.5, %v2938_v23  ;;  %v1261_v4 = vadd.f32 0.5, %v1165_v2  ;;  %2314 = vtanh.f32 %v983_v13 }
 0x170   :  { %3549 = vst [vmem:[#allocation75_spill] sm:$0xff] %v3106_v63  ;;  %v3115_v6 = vpop.eup %2292  ;;  %v764_v20 = vpop.f32.mrf.mxu0  ;;  %v1155_v55 = vmul.f32 0.5, %v2291_v18  ;;  %v986_v29 = vmul.f32 0.5, %v2942_v39  ;;  %v1438_v61 = vmul.f32 %v1342_v62, %v2936_v37  ;;  %v988_v51 = vmul.f32 0.5, %v2946_v43 }
 0x171   :  { %3550 = vst [vmem:[#allocation76_spill] sm:$0xff] %v3115_v6  ;;  %v3121_v53 = vpop.f32.mrf.mxu1  ;;  %v2295_v17 = vpop.eup %2294  ;;  %v1436_v12 = vmul.f32 %v1340_v3, %v764_v20  ;;  %2316 = vtanh.f32 %v978_v25  ;;  %v981_v18 = vmul.f32 0.5, %v2996_v27  ;;  %v1344_v50 = vmul.f32 %v1248_v9, %v2932_v0 }
 0x172   :  { %v2297_v59 = vpop.eup %2296  ;;  %v766_v6 = vpop.f32.mrf.mxu0  ;;  %v1168_v1 = vmul.f32 0.5, %v2295_v17  ;;  %2318 = vtanh.f32 %v985_v32  ;;  %v1251_v3 = vadd.f32 0.5, %v1155_v55  ;;  %v1441_v17 = vmul.f32 %v3097_v10, %v2944_v40 }
 0x173   :  { %v3132_v5 = vpop.f32.mrf.mxu1  ;;  %v2299_v28 = vpop.eup %2298  ;;  %v1437_v63 = vmul.f32 %v1341_v26, %v766_v6  ;;  %1643 = vmatprep.mubr.f32.mxu1 %v1436_v12  ;;  %v1166_v2 = vmul.f32 0.5, %v2297_v59  ;;  %v3144_v6 = vmul.f32 %v1261_v4, %v2903_v49  ;;  %2320 = vtanh.f32 %v986_v29 }
 0x174   :  { %3551 = vst [vmem:[#allocation77_spill] sm:$0xff] %v3132_v5  ;;  %v770_v56 = vpop.f32.mrf.mxu0  ;;  %v2301_v33 = vpop.eup %2300  ;;  %v1158_v20 = vmul.f32 0.5, %v2299_v28  ;;  %1644 = vmatmul.mubr.f32.vlgmr.msra.gmra.mxu1 %v1435_v54  ;;  %v1264_v59 = vadd.f32 0.5, %v1168_v1  ;;  %2322 = vtanh.f32 %v988_v51  ;;  %v984_v0 = vmul.f32 0.5, %v3008_v7 }
 0x175   :  { %v3137_v30 = vpop.f32.mrf.mxu1  ;;  %v1439_v5 = vmul.f32 %v1343_v8, %v770_v56  ;;  %v2303_v13 = vpop.eup %2302  ;;  %2159 = vmatprep.mubr.f32.mxu0 %v1437_v63  ;;  %v1259_v8 = vadd.f32 0.5, %v1163_v21  ;;  %2324 = vtanh.f32 %v981_v18  ;;  %v1169_v55 = vmul.f32 0.5, %v2301_v33 }
 0x176   :  { %v772_v62 = vpop.f32.mrf.mxu0  ;;  %v2305_v25 = vpop.eup %2304  ;;  %v1161_v32 = vmul.f32 0.5, %v2303_v13  ;;  %v1347_v28 = vmul.f32 %v1251_v3, %v2940_v38  ;;  %v1254_v40 = vadd.f32 0.5, %v1158_v20  ;;  %v989_v10 = vmul.f32 0.5, %v2950_v45  ;;  %v3554_v20 = vld [vmem:[#allocation31_spill] sm:$0xff] }
 0x177   :  { %v3141_v37 = vpop.f32.mrf.mxu1  ;;  %1648 = vmatprep.mubr.f32.mxu1 %v1439_v5  ;;  %v1440_v26 = vmul.f32 %v1344_v50, %v772_v62  ;;  %v2307_v9 = vpop.eup %2306  ;;  %v1262_v50 = vadd.f32 0.5, %v1166_v2  ;;  %v1171_v4 = vmul.f32 0.5, %v2305_v25  ;;  %v1444_v29 = vmul.f32 %v3102_v48, %v2952_v46 }
 0x178   :  { %3552 = vst [vmem:[#allocation78_spill] sm:$0xff] %v3141_v37  ;;  %v776_v63 = vpop.f32.mrf.mxu0  ;;  %1649 = vmatmul.mubr.f32.gmra.mxu1 %v1438_v61  ;;  %v991_v12 = vmul.f32 0.5, %v2954_v47  ;;  %v2309_v38 = vpop.eup %2308  ;;  %v1164_v1 = vmul.f32 0.5, %v2307_v9  ;;  %2326 = vtanh.f32 %v984_v0  ;;  %v987_v61 = vmul.f32 0.5, %v3020_v41  ;;  %v3556_v0 = vld [vmem:[#allocation25_spill] sm:$0xff] }
 0x179   :  { %v3149_v54 = vpop.f32.mrf.mxu1  ;;  %v1442_v49 = vmul.f32 %v3109_v42, %v776_v63  ;;  %2160 = vmatmul.mubr.f32.vlgmr.msra.gmra.mxu0 %v1440_v26  ;;  %v3160_v42 = vmul.f32 %v1259_v8, %v2898_v57  ;;  %v3166_v2 = vmul.f32 %v1264_v59, %v2913_v31  ;;  %v1257_v46 = vadd.f32 0.5, %v1161_v32  ;;  %v3557_v59 = vld [vmem:[#allocation33_spill] sm:$0xff] }
 0x17a   :  { %v778_v5 = vpop.f32.mrf.mxu0  ;;  %v2311_v18 = vpop.eup %2310  ;;  %v1265_v13 = vadd.f32 0.5, %v1169_v55  ;;  %v1350_v57 = vmul.f32 %v1254_v40, %v2948_v44  ;;  %2328 = vtanh.f32 %v989_v10  ;;  %v992_v62 = vmul.f32 0.5, %v3554_v20  ;;  %v3559_v10 = vld [vmem:[#allocation53_spill] sm:$0xff] }
 0x17b   :  { %v3154_v21 = vpop.f32.mrf.mxu1  ;;  %1653 = vmatprep.mubr.f32.mxu1 %v1442_v49  ;;  %v1443_v51 = vmul.f32 %v1347_v28, %v778_v5  ;;  %v2313_v3 = vpop.eup %2312  ;;  %v3174_v26 = vmul.f32 %v1262_v50, %v3556_v0  ;;  %v1267_v31 = vadd.f32 0.5, %v1171_v4  ;;  %2330 = vtanh.f32 %v991_v12  ;;  %v3558_v28 = vld [vmem:[#allocation30_spill] sm:$0xff]  ;;  %v3560_v4 = vld [vmem:[#allocation28_spill] sm:$0xff] }
 0x17c   :  { %3553 = vst [vmem:[#allocation79_spill] sm:$0xff] %v3154_v21  ;;  %v782_v33 = vpop.f32.mrf.mxu0  ;;  %1654 = vmatmul.mubr.f32.gmra.mxu1 %v1441_v17  ;;  %v994_v63 = vmul.f32 0.5, %v3557_v59  ;;  %v2315_v9 = vpop.eup %2314  ;;  %v1260_v32 = vadd.f32 0.5, %v1164_v1  ;;  %v1167_v44 = vmul.f32 0.5, %v2311_v18  ;;  %2332 = vtanh.f32 %v987_v61  ;;  %v3562_v61 = vld [vmem:[#allocation35_spill] sm:$0xff] }
 0x17d   :  { %v3163_v56 = vpop.f32.mrf.mxu1  ;;  %v1445_v48 = vmul.f32 %v3113_v14, %v782_v33  ;;  %2162 = vmatprep.mubr.f32.mxu0 %v1443_v51  ;;  %v1172_v14 = vmul.f32 0.5, %v2309_v38  ;;  %v1353_v40 = vmul.f32 %v1257_v46, %v3558_v28  ;;  %v990_v5 = vmul.f32 0.5, %v3559_v10  ;;  %v3561_v38 = vld [vmem:[#allocation32_spill] sm:$0xff] }
 0x17e   :  { %v784_v25 = vpop.f32.mrf.mxu0  ;;  %v3183_v12 = vmul.f32 %v1265_v13, %v3560_v4  ;;  %v2317_v51 = vpop.eup %2316  ;;  %v1174_v33 = vmul.f32 0.5, %v2313_v3  ;;  %2334 = vtanh.f32 %v992_v62  ;;  %v1447_v1 = vmul.f32 %v3118_v34, %v3561_v38  ;;  %v3564_v62 = vld [vmem:[#allocation34_spill] sm:$0xff] }
 0x17f   :  { %v3171_v8 = vpop.f32.mrf.mxu1  ;;  %1658 = vmatprep.mubr.f32.mxu1 %v1445_v48  ;;  %v1446_v49 = vmul.f32 %v1350_v57, %v784_v25  ;;  %v995_v18 = vmul.f32 0.5, %v3562_v61  ;;  %v2319_v57 = vpop.eup %2318  ;;  %v3191_v25 = vmul.f32 %v1267_v31, %v2922_v22  ;;  %2336 = vtanh.f32 %v994_v63 }
 0x180   :  { %3555 = vst [vmem:[#allocation31_spill] sm:$0xff] %v3171_v8  ;;  %v788_v17 = vpop.f32.mrf.mxu0  ;;  %1659 = vmatmul.mubr.f32.gmra.mxu1 %v1444_v29  ;;  %v1175_v13 = vmul.f32 0.5, %v2315_v9  ;;  %v2321_v3 = vpop.eup %2320  ;;  %v1356_v0 = vmul.f32 %v1260_v32, %v3564_v62  ;;  %v1263_v28 = vadd.f32 0.5, %v1167_v44  ;;  %2338 = vtanh.f32 %v990_v5  ;;  %v3566_v8 = vld [vmem:[#allocation58_spill] sm:$0xff]  ;;  %v3567_v32 = vld [vmem:[#allocation36_spill] sm:$0xff] }
 0x181   :  { %v3177_v55 = vpop.f32.mrf.mxu1  ;;  %v1448_v50 = vmul.f32 %v3124_v58, %v788_v17  ;;  %2163 = vmatmul.mubr.f32.gmra.mxu0 %v1446_v49  ;;  %v3565_v17 = vld [vmem:[#allocation37_spill] sm:$0xff]  ;;  %v1268_v49 = vadd.f32 0.5, %v1172_v14  ;;  %v2323_v38 = vpop.eup %2322  ;;  %v993_v22 = vmul.f32 0.5, %v3566_v8  ;;  %v1270_v9 = vadd.f32 0.5, %v1174_v33  ;;  %v3568_v14 = vld [vmem:[#allocation38_spill] sm:$0xff]  ;;  %v3569_v33 = vld [vmem:[#allocation64_spill] sm:$0xff] }
 0x182   :  { %v790_v46 = vpop.f32.mrf.mxu0  ;;  %v997_v34 = vmul.f32 0.5, %v3565_v17  ;;  %v2325_v63 = vpop.eup %2324  ;;  %2340 = vtanh.f32 %v995_v18  ;;  %v998_v62 = vmul.f32 0.5, %v3568_v14  ;;  %v1271_v5 = vadd.f32 0.5, %v1175_v13 }
 0x183   :  { %v3188_v48 = vpop.f32.mrf.mxu1  ;;  %v1449_v58 = vmul.f32 %v1353_v40, %v790_v46  ;;  %1663 = vmatprep.mubr.f32.mxu1 %v1448_v50  ;;  %v1177_v40 = vmul.f32 0.5, %v2319_v57  ;;  %v1450_v50 = vmul.f32 %v3127_v24, %v3567_v32  ;;  %v1178_v21 = vmul.f32 0.5, %v2321_v3  ;;  %v3570_v3 = vld [vmem:[#allocation40_spill] sm:$0xff] }
 0x184   :  { %3563 = vst [vmem:[#allocation25_spill] sm:$0xff] %v3188_v48  ;;  %v794_v29 = vpop.f32.mrf.mxu0  ;;  %v1170_v48 = vmul.f32 0.5, %v2317_v51  ;;  %1664 = vmatmul.mubr.f32.gmra.mxu1 %v1447_v1  ;;  %v1180_v37 = vmul.f32 0.5, %v2323_v38  ;;  %2342 = vtanh.f32 %v997_v34  ;;  %v996_v57 = vmul.f32 0.5, %v3569_v33 }
 0x185   :  { %v3195_v4 = vpop.f32.mrf.mxu1  ;;  %v1451_v31 = vmul.f32 %v3160_v42, %v794_v29  ;;  %2165 = vmatprep.mubr.f32.mxu0 %v1449_v58  ;;  %v1359_v42 = vmul.f32 %v1263_v28, %v2972_v60  ;;  %v2327_v24 = vpop.eup %2326  ;;  %v1173_v29 = vmul.f32 0.5, %v2325_v63  ;;  %2344 = vtanh.f32 %v993_v22 }
 0x186   :  { %v796_v46 = vpop.f32.mrf.mxu0  ;;  %v1266_v1 = vadd.f32 0.5, %v1170_v48  ;;  %v1273_v13 = vadd.f32 0.5, %v1177_v40  ;;  %v1000_v34 = vmul.f32 0.5, %v3570_v3  ;;  %v1364_v28 = vmul.f32 %v1268_v49, %v2926_v16 }
 0x187   :  { %v3201_v44 = vpop.f32.mrf.mxu1  ;;  %v1452_v51 = vmul.f32 %v1356_v0, %v796_v46  ;;  %1668 = vmatprep.mubr.f32.mxu1 %v1451_v31  ;;  %v3210_v0 = vmul.f32 %v1270_v9, %v2930_v35  ;;  %v2329_v38 = vpop.eup %2328  ;;  %2346 = vtanh.f32 %v998_v62  ;;  %v3571_v31 = vld [vmem:[#allocation39_spill] sm:$0xff]  ;;  %v1274_v22 = vadd.f32 0.5, %v1178_v21 }
 0x188   :  { %v800_v58 = vpop.f32.mrf.mxu0  ;;  %1669 = vmatmul.mubr.f32.gmra.mxu1 %v1450_v50  ;;  %v1453_v48 = vmul.f32 %v3144_v6, %v3571_v31  ;;  %v1176_v46 = vmul.f32 0.5, %v2327_v24  ;;  %2348 = vtanh.f32 %v996_v57  ;;  %v999_v35 = vmul.f32 0.5, %v3076_v11 }
 0x189   :  { %v3206_v18 = vpop.f32.mrf.mxu1  ;;  %v1454_v32 = vmul.f32 %v3174_v26, %v800_v58  ;;  %2166 = vmatmul.mubr.f32.gmra.mxu0 %v1452_v51  ;;  %v2331_v26 = vpop.eup %2330  ;;  %v1367_v50 = vmul.f32 %v1271_v5, %v2934_v36  ;;  %v1276_v16 = vadd.f32 0.5, %v1180_v37  ;;  %v1362_v49 = vmul.f32 %v1266_v1, %v2984_v15  ;;  %v3574_v37 = vld [vmem:[#allocation43_spill] sm:$0xff] }
 0x18a   :  { %v802_v60 = vpop.f32.mrf.mxu0  ;;  %v2333_v51 = vpop.eup %2332  ;;  %v1269_v62 = vadd.f32 0.5, %v1173_v29  ;;  %v3223_v21 = vmul.f32 %v1273_v13, %v2938_v23  ;;  %2350 = vtanh.f32 %v1000_v34  ;;  %v1181_v24 = vmul.f32 0.5, %v2329_v38 }
 0x18b   :  { %v1455_v63 = vmul.f32 %v1359_v42, %v802_v60  ;;  %1673 = vmatprep.mubr.f32.mxu1 %v1454_v32  ;;  %v3217_v9 = vpop.f32.mrf.mxu1  ;;  %v3572_v42 = vld [vmem:[#allocation41_spill] sm:$0xff]  ;;  %v2335_v32 = vpop.eup %2334  ;;  %v3573_v60 = vld [vmem:[#allocation42_spill] sm:$0xff]  ;;  %v1003_v5 = vmul.f32 0.5, %v3574_v37  ;;  %v1183_v29 = vmul.f32 0.5, %v2331_v26  ;;  %v1272_v23 = vadd.f32 0.5, %v1176_v46 }
 0x18c   :  { %v806_v40 = vpop.f32.mrf.mxu0  ;;  %v1001_v57 = vmul.f32 0.5, %v3572_v42  ;;  %1674 = vmatmul.mubr.f32.gmra.mxu1 %v1453_v48  ;;  %v1456_v36 = vmul.f32 %v3166_v2, %v3573_v60  ;;  %v2337_v1 = vpop.eup %2336  ;;  %v1179_v13 = vmul.f32 0.5, %v2333_v51  ;;  %2352 = vtanh.f32 %v999_v35 }
 0x18d   :  { %v1457_v6 = vmul.f32 %v3183_v12, %v806_v40  ;;  %2168 = vmatprep.mubr.f32.mxu0 %v1455_v63  ;;  %v1370_v12 = vmul.f32 %v1274_v22, %v2942_v39  ;;  %v3230_v34 = vpop.f32.mrf.mxu1  ;;  %v3233_v38 = vmul.f32 %v1276_v16, %v2946_v43  ;;  %v1365_v48 = vmul.f32 %v1269_v62, %v2996_v27  ;;  %v2339_v40 = vpop.eup %2338  ;;  %v3575_v39 = vld [vmem:[#allocation44_spill] sm:$0xff]  ;;  %v3577_v62 = vld [vmem:[#allocation45_spill] sm:$0xff] }
 0x18e   :  { %v808_v58 = vpop.f32.mrf.mxu0  ;;  %v1002_v2 = vmul.f32 0.5, %v3092_v19  ;;  %2354 = vtanh.f32 %v1001_v57  ;;  %v1004_v22 = vmul.f32 0.5, %v3575_v39  ;;  %v1277_v46 = vadd.f32 0.5, %v1181_v24 }
 0x18f   :  { %v1458_v15 = vmul.f32 %v1362_v49, %v808_v58  ;;  %1678 = vmatprep.mubr.f32.mxu1 %v1457_v6  ;;  %v1184_v35 = vmul.f32 0.5, %v2335_v32  ;;  %v2341_v51 = vpop.eup %2340  ;;  %v1186_v49 = vmul.f32 0.5, %v2337_v1  ;;  %2356 = vtanh.f32 %v1003_v5  ;;  %v3576_v6 = vld [vmem:[#allocation46_spill] sm:$0xff]  ;;  %v3242_v60 = vpop.f32.mrf.mxu1 }
 0x190   :  { %v812_v31 = vpop.f32.mrf.mxu0  ;;  %1679 = vmatmul.mubr.f32.gmra.mxu1 %v1456_v36  ;;  %v1006_v43 = vmul.f32 0.5, %v3576_v6  ;;  %v1279_v27 = vadd.f32 0.5, %v1183_v29  ;;  %v1368_v58 = vmul.f32 %v1272_v23, %v3008_v7  ;;  %v1275_v57 = vadd.f32 0.5, %v1179_v13 }
 0x191   :  { %v1460_v63 = vmul.f32 %v1364_v28, %v812_v31  ;;  %2169 = vmatmul.mubr.f32.gmra.mxu0 %v1458_v15  ;;  %v1459_v28 = vmul.f32 %v3191_v25, %v3577_v62  ;;  %v2343_v15 = vpop.eup %2342  ;;  %v1182_v24 = vmul.f32 0.5, %v2339_v40  ;;  %2358 = vtanh.f32 %v1002_v2  ;;  %v3578_v31 = vld [vmem:[#allocation47_spill] sm:$0xff]  ;;  %v3251_v62 = vpop.f32.mrf.mxu1 }
 0x192   :  { %v814_v26 = vpop.f32.mrf.mxu0  ;;  %v1005_v32 = vmul.f32 0.5, %v3121_v53  ;;  %v2345_v1 = vpop.eup %2344  ;;  %2360 = vtanh.f32 %v1004_v22  ;;  %v1007_v29 = vmul.f32 0.5, %v3578_v31  ;;  %v1373_v25 = vmul.f32 %v1277_v46, %v2950_v45 }
 0x193   :  { %v1461_v16 = vmul.f32 %v1365_v48, %v814_v26  ;;  %1683 = vmatprep.mubr.f32.mxu1 %v1460_v63  ;;  %v1280_v7 = vadd.f32 0.5, %v1184_v35  ;;  %v1282_v23 = vadd.f32 0.5, %v1186_v49  ;;  %2362 = vtanh.f32 %v1006_v43  ;;  %v3579_v26 = vld [vmem:[#allocation48_spill] sm:$0xff]  ;;  %v3580_v49 = vld [vmem:[#allocation49_spill] sm:$0xff] }
 0x194   :  { %v818_v36 = vpop.f32.mrf.mxu0  ;;  %1684 = vmatmul.mubr.f32.gmra.mxu1 %v1459_v28  ;;  %v1187_v63 = vmul.f32 0.5, %v2341_v51  ;;  %v2347_v40 = vpop.eup %2346  ;;  %v1189_v2 = vmul.f32 0.5, %v2343_v15  ;;  %v1008_v22 = vmul.f32 0.5, %v3137_v30  ;;  %v1278_v45 = vadd.f32 0.5, %v1182_v24  ;;  %v3581_v15 = vld [vmem:[#allocation50_spill] sm:$0xff] }
 0x195   :  { %v1463_v5 = vmul.f32 %v1367_v50, %v818_v36  ;;  %2171 = vmatprep.mubr.f32.mxu0 %v1461_v16  ;;  %v1462_v50 = vmul.f32 %v3210_v0, %v3579_v26  ;;  %v1371_v16 = vmul.f32 %v1275_v57, %v3020_v41  ;;  %v2349_v36 = vpop.eup %2348  ;;  %v1185_v46 = vmul.f32 0.5, %v2345_v1  ;;  %v3582_v1 = vld [vmem:[#allocation51_spill] sm:$0xff] }
 0x196   :  { %v820_v48 = vpop.f32.mrf.mxu0  ;;  %2364 = vtanh.f32 %v1005_v32  ;;  %v3254_v51 = vmul.f32 %v1279_v27, %v2954_v47  ;;  %v1009_v43 = vmul.f32 0.5, %v3580_v49  ;;  %v1376_v41 = vmul.f32 %v1280_v7, %v3554_v20 }
 0x197   :  { %v1464_v13 = vmul.f32 %v1368_v58, %v820_v48  ;;  %1688 = vmatprep.mubr.f32.mxu1 %v1463_v5  ;;  %2366 = vtanh.f32 %v1007_v29  ;;  %v2351_v58 = vpop.eup %2350  ;;  %v3259_v57 = vmul.f32 %v1282_v23, %v3557_v59  ;;  %v1010_v24 = vmul.f32 0.5, %v3581_v15  ;;  %v3264_v29 = vpop.f32.mrf.mxu1 }
 0x198   :  { %v824_v28 = vpop.f32.mrf.mxu0  ;;  %1689 = vmatmul.mubr.f32.gmra.mxu1 %v1462_v50  ;;  %v1285_v32 = vadd.f32 0.5, %v1189_v2  ;;  %v1465_v47 = vmul.f32 %v3223_v21, %v3582_v1  ;;  %v1188_v27 = vmul.f32 0.5, %v2349_v36  ;;  %2368 = vtanh.f32 %v1008_v22  ;;  %v3584_v22 = vld [vmem:[#allocation55_spill] sm:$0xff] }
 0x199   :  { %v1466_v35 = vmul.f32 %v1370_v12, %v824_v28  ;;  %2172 = vmatmul.mubr.f32.gmra.mxu0 %v1464_v13  ;;  %v1283_v12 = vadd.f32 0.5, %v1187_v63  ;;  %v2353_v13 = vpop.eup %2352  ;;  %v1374_v20 = vmul.f32 %v1278_v45, %v3559_v10  ;;  %v1281_v7 = vadd.f32 0.5, %v1185_v46  ;;  %v3583_v63 = vld [vmem:[#allocation52_spill] sm:$0xff] }
 0x19a   :  { %v826_v0 = vpop.f32.mrf.mxu0  ;;  %v1011_v59 = vmul.f32 0.5, %v3149_v54  ;;  %v1192_v26 = vmul.f32 0.5, %v2351_v58  ;;  %2370 = vtanh.f32 %v1009_v43  ;;  %v1012_v2 = vmul.f32 0.5, %v3583_v63  ;;  %v3276_v58 = vpop.f32.mrf.mxu1 }
 0x19b   :  { %v1467_v5 = vmul.f32 %v1371_v16, %v826_v0  ;;  %1693 = vmatprep.mubr.f32.mxu1 %v1466_v35  ;;  %v1190_v21 = vmul.f32 0.5, %v2347_v40  ;;  %v2355_v16 = vpop.eup %2354  ;;  %2372 = vtanh.f32 %v1010_v24  ;;  %v1013_v28 = vmul.f32 0.5, %v3584_v22 }
 0x19c   :  { %v830_v48 = vpop.f32.mrf.mxu0  ;;  %1694 = vmatmul.mubr.f32.gmra.mxu1 %v1465_v47  ;;  %v1379_v10 = vmul.f32 %v1283_v12, %v3562_v61  ;;  %v2357_v45 = vpop.eup %2356  ;;  %v3272_v46 = vmul.f32 %v1285_v32, %v3565_v17  ;;  %v1284_v43 = vadd.f32 0.5, %v1188_v27  ;;  %v1191_v0 = vmul.f32 0.5, %v2353_v13 }
 0x19d   :  { %v1469_v23 = vmul.f32 %v1373_v25, %v830_v48  ;;  %2174 = vmatprep.mubr.f32.mxu0 %v1467_v5  ;;  %v3585_v25 = vld [vmem:[#allocation56_spill] sm:$0xff]  ;;  %v1377_v24 = vmul.f32 %v1281_v7, %v3566_v8  ;;  %2374 = vtanh.f32 %v1011_v59  ;;  %v1014_v5 = vmul.f32 0.5, %v3163_v56  ;;  %v3586_v48 = vld [vmem:[#allocation59_spill] sm:$0xff]  ;;  %v3587_v7 = vld [vmem:[#allocation57_spill] sm:$0xff] }
 0x19e   :  { %v832_v50 = vpop.f32.mrf.mxu0  ;;  %v1468_v35 = vmul.f32 %v3233_v38, %v3585_v25  ;;  %v2359_v61 = vpop.eup %2358  ;;  %v1288_v12 = vadd.f32 0.5, %v1192_v26  ;;  %2376 = vtanh.f32 %v1012_v2  ;;  %v1286_v32 = vadd.f32 0.5, %v1190_v21 }
 0x19f   :  { %v1470_v36 = vmul.f32 %v1374_v20, %v832_v50  ;;  %1698 = vmatprep.mubr.f32.mxu1 %v1469_v23  ;;  %v1193_v47 = vmul.f32 0.5, %v2355_v16  ;;  %v2361_v38 = vpop.eup %2360  ;;  %v1195_v27 = vmul.f32 0.5, %v2357_v45  ;;  %2378 = vtanh.f32 %v1013_v28  ;;  %v3588_v23 = vld [vmem:[#allocation60_spill] sm:$0xff]  ;;  %v3285_v50 = vpop.f32.mrf.mxu1 }
 0x1a0   :  { %v836_v40 = vpop.f32.mrf.mxu0  ;;  %1699 = vmatmul.mubr.f32.gmra.mxu1 %v1468_v35  ;;  %v1016_v13 = vmul.f32 0.5, %v3586_v48  ;;  %v2363_v8 = vpop.eup %2362  ;;  %v1015_v59 = vmul.f32 0.5, %v3587_v7  ;;  %v1380_v26 = vmul.f32 %v1284_v43, %v3569_v33  ;;  %v1287_v2 = vadd.f32 0.5, %v1191_v0 }
 0x1a1   :  { %v1472_v1 = vmul.f32 %v1376_v41, %v836_v40  ;;  %2175 = vmatmul.mubr.f32.gmra.mxu0 %v1470_v36  ;;  %v1471_v41 = vmul.f32 %v3254_v51, %v3588_v23  ;;  %v1194_v16 = vmul.f32 0.5, %v2359_v61  ;;  %2380 = vtanh.f32 %v1014_v5  ;;  %v3591_v23 = vld [vmem:[#allocation63_spill] sm:$0xff] }
 0x1a2   :  { %v838_v17 = vpop.f32.mrf.mxu0  ;;  %v1017_v28 = vmul.f32 0.5, %v3177_v55  ;;  %v3289_v25 = vmul.f32 %v1288_v12, %v3570_v3  ;;  %v1196_v35 = vmul.f32 0.5, %v2361_v38  ;;  %v1382_v51 = vmul.f32 %v1286_v32, %v3568_v14 }
 0x1a3   :  { %v1473_v20 = vmul.f32 %v1377_v24, %v838_v17  ;;  %1703 = vmatprep.mubr.f32.mxu1 %v1472_v1  ;;  %v2365_v45 = vpop.eup %2364  ;;  %v1289_v33 = vadd.f32 0.5, %v1193_v47  ;;  %v1291_v0 = vadd.f32 0.5, %v1195_v27  ;;  %2382 = vtanh.f32 %v1016_v13  ;;  %v3589_v24 = vld [vmem:[#allocation65_spill] sm:$0xff]  ;;  %v3297_v17 = vpop.f32.mrf.mxu1 }
 0x1a4   :  { %v842_v21 = vpop.f32.mrf.mxu0  ;;  %1704 = vmatmul.mubr.f32.gmra.mxu1 %v1471_v41  ;;  %v2367_v43 = vpop.eup %2366  ;;  %v1019_v1 = vmul.f32 0.5, %v3589_v24  ;;  %2384 = vtanh.f32 %v1015_v59  ;;  %v1383_v3 = vmul.f32 %v1287_v2, %v3076_v11  ;;  %v1020_v12 = vmul.f32 0.5, %v3195_v4 }
 0x1a5   :  { %v1475_v36 = vmul.f32 %v1379_v10, %v842_v21  ;;  %2177 = vmatprep.mubr.f32.mxu0 %v1473_v20  ;;  %v3590_v10 = vld [vmem:[#allocation66_spill] sm:$0xff]  ;;  %v2369_v14 = vpop.eup %2368  ;;  %v1290_v32 = vadd.f32 0.5, %v1194_v16  ;;  %v1197_v47 = vmul.f32 0.5, %v2365_v45  ;;  %2386 = vtanh.f32 %v1017_v28 }
 0x1a6   :  { %v844_v40 = vpop.f32.mrf.mxu0  ;;  %v1474_v61 = vmul.f32 %v3259_v57, %v3590_v10  ;;  %v1292_v13 = vadd.f32 0.5, %v1196_v35  ;;  %v1199_v20 = vmul.f32 0.5, %v2367_v43  ;;  %v1018_v59 = vmul.f32 0.5, %v3591_v23 }
 0x1a7   :  { %v1476_v5 = vmul.f32 %v1380_v26, %v844_v40  ;;  %1708 = vmatprep.mubr.f32.mxu1 %v1475_v36  ;;  %v1385_v57 = vmul.f32 %v1289_v33, %v3572_v42  ;;  %v2371_v11 = vpop.eup %2370  ;;  %v1198_v26 = vmul.f32 0.5, %v2363_v8  ;;  %2388 = vtanh.f32 %v1019_v1  ;;  %v3592_v36 = vld [vmem:[#allocation71_spill] sm:$0xff]  ;;  %v3305_v40 = vpop.f32.mrf.mxu1 }
 0x1a8   :  { %v848_v38 = vpop.f32.mrf.mxu0  ;;  %1709 = vmatmul.mubr.f32.gmra.mxu1 %v1474_v61  ;;  %v1022_v2 = vmul.f32 0.5, %v3082_v52  ;;  %v2373_v16 = vpop.eup %2372  ;;  %v1477_v28 = vmul.f32 %v3272_v46, %v3592_v36  ;;  %v1200_v45 = vmul.f32 0.5, %v2369_v14  ;;  %2390 = vtanh.f32 %v1020_v12  ;;  %v3593_v46 = vld [vmem:[#allocation68_spill] sm:$0xff]  ;;  %v3594_v14 = vld [vmem:[#allocation74_spill] sm:$0xff] }
 0x1a9   :  { %v1478_v27 = vmul.f32 %v1382_v51, %v848_v38  ;;  %2178 = vmatmul.mubr.f32.gmra.mxu0 %v1476_v5  ;;  %v1023_v35 = vmul.f32 0.5, %v3206_v18  ;;  %v1387_v42 = vmul.f32 %v1291_v0, %v3574_v37  ;;  %v1386_v8 = vmul.f32 %v1290_v32, %v3092_v19  ;;  %v3595_v32 = vld [vmem:[#allocation75_spill] sm:$0xff] }
 0x1aa   :  { %v850_v41 = vpop.f32.mrf.mxu0  ;;  %v1293_v33 = vadd.f32 0.5, %v1197_v47  ;;  %v2375_v1 = vpop.eup %2374  ;;  %v1388_v5 = vmul.f32 %v1292_v13, %v3575_v39  ;;  %v1295_v10 = vadd.f32 0.5, %v1199_v20  ;;  %2392 = vtanh.f32 %v1018_v59 }
 0x1ab   :  { %v1479_v21 = vmul.f32 %v1383_v3, %v850_v41  ;;  %1713 = vmatprep.mubr.f32.mxu1 %v1478_v27  ;;  %v1021_v61 = vmul.f32 0.5, %v3593_v46  ;;  %v2377_v12 = vpop.eup %2376  ;;  %v1202_v38 = vmul.f32 0.5, %v2373_v16  ;;  %2394 = vtanh.f32 %v1022_v2  ;;  %v3314_v39 = vpop.f32.mrf.mxu1 }
 0x1ac   :  { %v854_v51 = vpop.f32.mrf.mxu0  ;;  %1714 = vmatmul.mubr.f32.gmra.mxu1 %v1477_v28  ;;  %v1025_v27 = vmul.f32 0.5, %v3594_v14  ;;  %v2379_v19 = vpop.eup %2378  ;;  %v1294_v0 = vadd.f32 0.5, %v1198_v26  ;;  %v1480_v47 = vmul.f32 %v3289_v25, %v3595_v32  ;;  %v1296_v41 = vadd.f32 0.5, %v1200_v45  ;;  %v3596_v26 = vld [vmem:[#allocation72_spill] sm:$0xff] }
 0x1ad   :  { %v1481_v43 = vmul.f32 %v1385_v57, %v854_v51  ;;  %2180 = vmatprep.mubr.f32.mxu0 %v1479_v21  ;;  %2396 = vtanh.f32 %v1023_v35  ;;  %v1389_v20 = vmul.f32 %v1293_v33, %v3121_v53  ;;  %v1203_v59 = vmul.f32 0.5, %v2375_v1  ;;  %v3598_v33 = vld [vmem:[#allocation77_spill] sm:$0xff] }
 0x1ae   :  { %v856_v3 = vpop.f32.mrf.mxu0  ;;  %v1026_v57 = vmul.f32 0.5, %v3230_v34  ;;  %v2381_v21 = vpop.eup %2380  ;;  %v1391_v16 = vmul.f32 %v1295_v10, %v3578_v31  ;;  %v1201_v36 = vmul.f32 0.5, %v2371_v11  ;;  %2398 = vtanh.f32 %v1021_v61 }
 0x1af   :  { %v1482_v37 = vmul.f32 %v1386_v8, %v856_v3  ;;  %1718 = vmatprep.mubr.f32.mxu1 %v1481_v43  ;;  %v1024_v28 = vmul.f32 0.5, %v3596_v26  ;;  %v1298_v45 = vadd.f32 0.5, %v1202_v38  ;;  %v1205_v35 = vmul.f32 0.5, %v2379_v19  ;;  %v3597_v8 = vld [vmem:[#allocation62_spill] sm:$0xff]  ;;  %v3324_v11 = vpop.f32.mrf.mxu1 }
 0x1b0   :  { %v860_v13 = vpop.f32.mrf.mxu0  ;;  %1719 = vmatmul.mubr.f32.gmra.mxu1 %v1480_v47  ;;  %2400 = vtanh.f32 %v1025_v27  ;;  %v2383_v53 = vpop.eup %2382  ;;  %v1483_v43 = vmul.f32 %v1387_v42, %v3598_v33  ;;  %v1392_v1 = vmul.f32 %v1296_v41, %v3137_v30  ;;  %v1029_v31 = vmul.f32 0.5, %v3251_v62 }
 0x1b1   :  { %v1484_v2 = vmul.f32 %v1388_v5, %v860_v13  ;;  %2181 = vmatmul.mubr.f32.gmra.mxu0 %v1482_v37  ;;  %2402 = vtanh.f32 %v3597_v8  ;;  %v2385_v10 = vpop.eup %2384  ;;  %v1299_v61 = vadd.f32 0.5, %v1203_v59  ;;  %v1206_v3 = vmul.f32 0.5, %v2381_v21  ;;  %v3599_v59 = vld [vmem:[#allocation61_spill] sm:$0xff] }
 0x1b2   :  { %v862_v25 = vpop.f32.mrf.mxu0  ;;  %2404 = vtanh.f32 %v1026_v57  ;;  %v2387_v27 = vpop.eup %2386  ;;  %v1390_v37 = vmul.f32 %v1294_v0, %v3576_v6  ;;  %v1297_v19 = vadd.f32 0.5, %v1201_v36  ;;  %v1204_v32 = vmul.f32 0.5, %v2377_v12  ;;  %v3600_v57 = vld [vmem:[#allocation78_spill] sm:$0xff] }
 0x1b3   :  { %v1485_v51 = vmul.f32 %v1389_v20, %v862_v25  ;;  %1723 = vmatprep.mubr.f32.mxu1 %v1484_v2  ;;  %2406 = vtanh.f32 %v1024_v28  ;;  %v1394_v30 = vmul.f32 %v1298_v45, %v3581_v15  ;;  %v1301_v47 = vadd.f32 0.5, %v1205_v35  ;;  %v3331_v6 = vpop.f32.mrf.mxu1  ;;  %v3601_v45 = vld [vmem:[#allocation20_spill] sm:$0xff] }
 0x1b4   :  { %v866_v5 = vpop.f32.mrf.mxu0  ;;  %1724 = vmatmul.mubr.f32.gmra.mxu1 %v1483_v43  ;;  %v1208_v41 = vmul.f32 0.5, %v2383_v53  ;;  %v2389_v20 = vpop.eup %2388  ;;  %v1315_v2 = vadd.f32 0.5, %v3599_v59  ;;  %v1486_v21 = vmul.f32 %v1390_v37, %v3600_v57  ;;  %2408 = vtanh.f32 %v1029_v31 }
 0x1b5   :  { %v1487_v38 = vmul.f32 %v1391_v16, %v866_v5  ;;  %2183 = vmatprep.mubr.f32.mxu0 %v1485_v51  ;;  %v1032_v16 = vmul.f32 0.5, %v3276_v58  ;;  %v2391_v0 = vpop.eup %2390  ;;  %v1395_v36 = vmul.f32 %v1299_v61, %v3149_v54  ;;  %v1302_v28 = vadd.f32 0.5, %v1206_v3  ;;  %v3602_v61 = vld [vmem:[#allocation79_spill] sm:$0xff]  ;;  %v3338_v37 = vpop.f32.mrf.mxu1 }
 0x1b6   :  { %v868_v42 = vpop.f32.mrf.mxu0  ;;  %v1209_v15 = vmul.f32 0.5, %v2387_v27  ;;  %v1039_v35 = vmul.f32 0.5, %v3601_v45  ;;  %v1393_v51 = vmul.f32 %v1297_v19, %v3580_v49  ;;  %v1300_v53 = vadd.f32 0.5, %v1204_v32  ;;  %v3603_v49 = vld [vmem:[#allocation54_spill] sm:$0xff] }
 0x1b7   :  { %v1488_v13 = vmul.f32 %v1392_v1, %v868_v42  ;;  %1728 = vmatprep.mubr.f32.mxu1 %v1487_v38  ;;  %v1207_v8 = vmul.f32 0.5, %v2385_v10  ;;  %v2393_v43 = vpop.eup %2392  ;;  %v1397_v1 = vmul.f32 %v1301_v47, %v3584_v22  ;;  %v1304_v31 = vadd.f32 0.5, %v1208_v41  ;;  %v3604_v41 = vld [vmem:[#allocation12_spill] sm:$0xff] }
 0x1b8   :  { %v872_v12 = vpop.f32.mrf.mxu0  ;;  %1729 = vmatmul.mubr.f32.gmra.mxu1 %v1486_v21  ;;  %v1211_v5 = vmul.f32 0.5, %v2389_v20  ;;  %v2395_v54 = vpop.eup %2394  ;;  %v1489_v3 = vmul.f32 %v1393_v51, %v3602_v61  ;;  %v1212_v27 = vmul.f32 0.5, %v2391_v0  ;;  %2410 = vtanh.f32 %v1032_v16  ;;  %v3606_v51 = vld [vmem:[#allocation31_spill] sm:$0xff] }
 0x1b9   :  { %v1490_v25 = vmul.f32 %v1394_v30, %v872_v12  ;;  %2184 = vmatmul.mubr.f32.gmra.mxu0 %v1488_v13  ;;  %v3341_v19 = vmul.f32 0.5, %v3603_v49  ;;  %v1398_v32 = vmul.f32 %v1302_v28, %v3163_v56  ;;  %v1305_v30 = vadd.f32 0.5, %v1209_v15  ;;  %v3605_v15 = vld [vmem:[#allocation67_spill] sm:$0xff] }
 0x1ba   :  { %v874_v33 = vpop.f32.mrf.mxu0  ;;  %v2397_v10 = vpop.eup %2396  ;;  %v1035_v22 = vmul.f32 0.5, %v3297_v17  ;;  %v3346_v13 = vmul.f32 %v1315_v2, %v3604_v41  ;;  %v1396_v20 = vmul.f32 %v1300_v53, %v3583_v63  ;;  %v1303_v59 = vadd.f32 0.5, %v1207_v8 }
 0x1bb   :  { %v1491_v38 = vmul.f32 %v1395_v36, %v874_v33  ;;  %1733 = vmatprep.mubr.f32.mxu1 %v1490_v25  ;;  %v1210_v57 = vmul.f32 0.5, %v2393_v43  ;;  %v2399_v16 = vpop.eup %2398  ;;  %v1400_v12 = vmul.f32 %v1304_v31, %v3586_v48  ;;  %v1307_v0 = vadd.f32 0.5, %v1211_v5  ;;  %v3354_v63 = vpop.f32.mrf.mxu1 }
 0x1bc   :  { %v878_v42 = vpop.f32.mrf.mxu0  ;;  %1734 = vmatmul.mubr.f32.gmra.mxu1 %v1489_v3  ;;  %v1214_v36 = vmul.f32 0.5, %v2395_v54  ;;  %v3351_v25 = vmul.f32 0.5, %v3605_v15  ;;  %v1492_v2 = vmul.f32 %v1396_v20, %v3606_v51  ;;  %v1308_v33 = vadd.f32 0.5, %v1212_v27 }
 0x1bd   :  { %v1493_v47 = vmul.f32 %v1397_v1, %v878_v42  ;;  %2186 = vmatprep.mubr.f32.mxu0 %v1491_v38  ;;  %v2401_v28 = vpop.eup %2400  ;;  %v1215_v1 = vmul.f32 0.5, %v2397_v10  ;;  %v1401_v43 = vmul.f32 %v1305_v30, %v3177_v55  ;;  %2412 = vtanh.f32 %v1035_v22  ;;  %v3607_v38 = vld [vmem:[#allocation21_spill] sm:$0xff] }
 0x1be   :  { %v880_v21 = vpop.f32.mrf.mxu0  ;;  %v3356_v8 = vpop.eup %2402  ;;  %v1038_v48 = vmul.f32 0.5, %v3314_v39  ;;  %v1040_v54 = vmul.f32 0.5, %v3607_v38  ;;  %v1399_v61 = vmul.f32 %v1303_v59, %v3587_v7  ;;  %v1306_v3 = vadd.f32 0.5, %v1210_v57  ;;  %v3608_v30 = vld [vmem:[#allocation25_spill] sm:$0xff] }
 0x1bf   :  { %v1494_v56 = vmul.f32 %v1398_v32, %v880_v21  ;;  %1738 = vmatprep.mubr.f32.mxu1 %v1493_v47  ;;  %v2405_v5 = vpop.eup %2404  ;;  %v1213_v27 = vmul.f32 0.5, %v2399_v16  ;;  %v1403_v10 = vmul.f32 %v1307_v0, %v3589_v24  ;;  %v1310_v32 = vadd.f32 0.5, %v1214_v36  ;;  %v3365_v21 = vpop.f32.mrf.mxu1 }
 0x1c0   :  { %v884_v53 = vpop.f32.mrf.mxu0  ;;  %1739 = vmatmul.mubr.f32.gmra.mxu1 %v1492_v2  ;;  %v2407_v49 = vpop.eup %2406  ;;  %v1217_v47 = vmul.f32 0.5, %v2401_v28  ;;  %2414 = vtanh.f32 %v1039_v35  ;;  %v1495_v22 = vmul.f32 %v1399_v61, %v3608_v30  ;;  %v1404_v41 = vmul.f32 %v1308_v33, %v3195_v4 }
 0x1c1   :  { %v1496_v31 = vmul.f32 %v1400_v12, %v884_v53  ;;  %2187 = vmatmul.mubr.f32.gmra.mxu0 %v1494_v56  ;;  %v1311_v20 = vadd.f32 0.5, %v1215_v1  ;;  %v2409_v59 = vpop.eup %2408  ;;  %v1218_v57 = vmul.f32 0.5, %v2405_v5  ;;  %2416 = vtanh.f32 %v1038_v48  ;;  %v3609_v56 = vld [vmem:[#allocation23_spill] sm:$0xff]  ;;  %v3373_v53 = vpop.f32.mrf.mxu1 }
 0x1c2   :  { %v886_v42 = vpop.f32.mrf.mxu0  ;;  %v1041_v16 = vmul.f32 0.5, %v3331_v6  ;;  %2418 = vtanh.f32 %v1040_v54  ;;  %v1402_v24 = vmul.f32 %v1306_v3, %v3591_v23  ;;  %v1309_v0 = vadd.f32 0.5, %v1213_v27  ;;  %v3611_v27 = vld [vmem:[#allocation69_spill] sm:$0xff] }
 0x1c3   :  { %v1497_v55 = vmul.f32 %v1401_v43, %v886_v42  ;;  %1743 = vmatprep.mubr.f32.mxu1 %v1496_v31  ;;  %v1216_v35 = vmul.f32 0.5, %v2407_v49  ;;  %v1043_v4 = vmul.f32 0.5, %v3609_v56  ;;  %v1406_v28 = vmul.f32 %v1310_v32, %v3082_v52  ;;  %v3610_v52 = vld [vmem:[#allocation22_spill] sm:$0xff] }
 0x1c4   :  { %v890_v7 = vpop.f32.mrf.mxu0  ;;  %1744 = vmatmul.mubr.f32.gmra.mxu1 %v1495_v22  ;;  %v1313_v15 = vadd.f32 0.5, %v1217_v47  ;;  %v1498_v2 = vmul.f32 %v1402_v24, %v3201_v44  ;;  %v1407_v33 = vmul.f32 %v1311_v20, %v3206_v18  ;;  %v1221_v1 = vmul.f32 0.5, %v2409_v59  ;;  %v3612_v49 = vld [vmem:[#allocation26_spill] sm:$0xff]  ;;  %v3383_v22 = vpop.f32.mrf.mxu1 }
 0x1c5   :  { %v1499_v12 = vmul.f32 %v1403_v10, %v890_v7  ;;  %2189 = vmatprep.mubr.f32.mxu0 %v1497_v55  ;;  %v1316_v23 = vadd.f32 0.5, %v3341_v19  ;;  %v2411_v48 = vpop.eup %2410  ;;  %v1314_v31 = vadd.f32 0.5, %v1218_v57  ;;  %2420 = vtanh.f32 %v1041_v16 }
 0x1c6   :  { %v892_v36 = vpop.f32.mrf.mxu0  ;;  %v1044_v5 = vmul.f32 0.5, %v3354_v63  ;;  %v1042_v61 = vmul.f32 0.5, %v3610_v52  ;;  %v1405_v3 = vmul.f32 %v1309_v0, %v3593_v46  ;;  %v1312_v44 = vadd.f32 0.5, %v1216_v35  ;;  %v3613_v46 = vld [vmem:[#allocation13_spill] sm:$0xff] }
 0x1c7   :  { %v1500_v51 = vmul.f32 %v1404_v41, %v892_v36  ;;  %1748 = vmatprep.mubr.f32.mxu1 %v1499_v12  ;;  %v1223_v42 = vmul.f32 0.5, %v3611_v27  ;;  %2422 = vtanh.f32 %v1043_v4  ;;  %v1046_v10 = vmul.f32 0.5, %v3612_v49  ;;  %v3615_v35 = vld [vmem:[#allocation29_spill] sm:$0xff] }
 0x1c8   :  { %v896_v43 = vpop.f32.mrf.mxu0  ;;  %1749 = vmatmul.mubr.f32.gmra.mxu1 %v1498_v2  ;;  %v1409_v19 = vmul.f32 %v1313_v15, %v3594_v14  ;;  %v1501_v47 = vmul.f32 %v1405_v3, %v3217_v9  ;;  %v1317_v55 = vadd.f32 0.5, %v1221_v1  ;;  %v1224_v30 = vmul.f32 0.5, %v2411_v48  ;;  %v3614_v14 = vld [vmem:[#allocation24_spill] sm:$0xff]  ;;  %v3395_v1 = vpop.f32.mrf.mxu1 }
 0x1c9   :  { %v1502_v54 = vmul.f32 %v1406_v28, %v896_v43  ;;  %2190 = vmatmul.mubr.f32.gmra.mxu0 %v1500_v51  ;;  %v1412_v20 = vmul.f32 %v1316_v23, %v3613_v46  ;;  %v1410_v7 = vmul.f32 %v1314_v31, %v3230_v34  ;;  %2424 = vtanh.f32 %v1044_v5  ;;  %v3616_v34 = vld [vmem:[#allocation73_spill] sm:$0xff] }
 0x1ca   :  { %v898_v18 = vpop.f32.mrf.mxu0  ;;  %v1047_v59 = vmul.f32 0.5, %v3373_v53  ;;  %v2413_v16 = vpop.eup %2412  ;;  %2426 = vtanh.f32 %v1042_v61  ;;  %v1045_v12 = vmul.f32 0.5, %v3614_v14  ;;  %v1408_v9 = vmul.f32 %v1312_v44, %v3596_v26 }
 0x1cb   :  { %v1503_v32 = vmul.f32 %v1407_v33, %v898_v18  ;;  %1753 = vmatprep.mubr.f32.mxu1 %v1502_v54  ;;  %v1319_v0 = vadd.f32 0.5, %v1223_v42  ;;  %2428 = vtanh.f32 %v1046_v10  ;;  %v1049_v36 = vmul.f32 0.5, %v3615_v35  ;;  %v3617_v54 = vld [vmem:[#allocation70_spill] sm:$0xff] }
 0x1cc   :  { %v902_v41 = vpop.f32.mrf.mxu0  ;;  %1754 = vmatmul.mubr.f32.gmra.mxu1 %v1501_v47  ;;  %v1226_v28 = vmul.f32 0.5, %v3616_v34  ;;  %v1318_v15 = vadd.f32 0.5, %v3351_v25  ;;  %v1504_v51 = vmul.f32 %v1408_v9, %v3242_v60  ;;  %v1413_v2 = vmul.f32 %v1317_v55, %v3251_v62  ;;  %v3618_v25 = vld [vmem:[#allocation27_spill] sm:$0xff] }
 0x1cd   :  { %v1505_v57 = vmul.f32 %v1409_v19, %v902_v41  ;;  %2192 = vmatprep.mubr.f32.mxu0 %v1503_v32  ;;  %v1320_v33 = vadd.f32 0.5, %v1224_v30  ;;  %v2415_v43 = vpop.eup %2414  ;;  %v1227_v23 = vmul.f32 0.5, %v2413_v16  ;;  %2430 = vtanh.f32 %v1047_v59  ;;  %v3619_v62 = vld [vmem:[#allocation15_spill] sm:$0xff] }
 0x1ce   :  { %v904_v24 = vpop.f32.mrf.mxu0  ;;  %v1050_v48 = vmul.f32 0.5, %v3395_v1  ;;  %v2417_v5 = vpop.eup %2416  ;;  %v1225_v61 = vmul.f32 0.5, %v3617_v54  ;;  %2432 = vtanh.f32 %v1045_v12  ;;  %v1048_v3 = vmul.f32 0.5, %v3618_v25  ;;  %v3624_v54 = vld [vmem:[#allocation19_spill] sm:$0xff] }
 0x1cf   :  { %v1506_v4 = vmul.f32 %v1410_v7, %v904_v24  ;;  %1758 = vmatprep.mubr.f32.mxu1 %v1505_v57  ;;  %v1415_v44 = vmul.f32 %v1319_v0, %v3619_v62  ;;  %v2419_v18 = vpop.eup %2418  ;;  %2434 = vtanh.f32 %v1049_v36  ;;  %v1322_v42 = vadd.f32 0.5, %v1226_v28  ;;  %v3621_v57 = vld [vmem:[#allocation76_spill] sm:$0xff] }
 0x1d0   :  { %v908_v26 = vpop.f32.mrf.mxu0  ;;  %1759 = vmatmul.mubr.f32.gmra.mxu1 %v1504_v51  ;;  %v1229_v10 = vmul.f32 0.5, %v3356_v8  ;;  %v1507_v19 = vmul.f32 %v3346_v13, %v3264_v29  ;;  %v1416_v32 = vmul.f32 %v1320_v33, %v3276_v58  ;;  %v1323_v55 = vadd.f32 0.5, %v1227_v23  ;;  %v3622_v29 = vld [vmem:[#allocation17_spill] sm:$0xff] }
 0x1d1   :  { %v1508_v31 = vmul.f32 %v1412_v20, %v908_v26  ;;  %2193 = vmatmul.mubr.f32.gmra.mxu0 %v1506_v4  ;;  %v1230_v30 = vmul.f32 0.5, %v2417_v5  ;;  %2436 = vtanh.f32 %v1050_v48  ;;  %v3620_v20 = vld [vmem:[#allocation14_spill] sm:$0xff]  ;;  %v1321_v59 = vadd.f32 0.5, %v1225_v61 }
 0x1d2   :  { %v910_v60 = vpop.f32.mrf.mxu0  ;;  %v2421_v46 = vpop.eup %2420  ;;  %v1414_v7 = vmul.f32 %v1318_v15, %v3620_v20  ;;  %v1228_v16 = vmul.f32 0.5, %v3621_v57  ;;  %2438 = vtanh.f32 %v1048_v3  ;;  %v1418_v13 = vmul.f32 %v1322_v42, %v3622_v29 }
 0x1d3   :  { %v1509_v27 = vmul.f32 %v1413_v2, %v910_v60  ;;  %1763 = vmatprep.mubr.f32.mxu1 %v1508_v31  ;;  %v1325_v58 = vadd.f32 0.5, %v1229_v10  ;;  %v1232_v9 = vmul.f32 0.5, %v2419_v18  ;;  %v1419_v4 = vmul.f32 %v1323_v55, %v3297_v17  ;;  %v3623_v2 = vld [vmem:[#allocation16_spill] sm:$0xff]  ;;  %v3625_v10 = vld [vmem:[#allocation18_spill] sm:$0xff] }
 0x1d4   :  { %v914_v47 = vpop.f32.mrf.mxu0  ;;  %1764 = vmatmul.mubr.f32.gmra.mxu1 %v1507_v19  ;;  %v2423_v24 = vpop.eup %2422  ;;  %v1510_v0 = vmul.f32 %v1414_v7, %v3285_v50  ;;  %v1326_v34 = vadd.f32 0.5, %v1230_v30  ;;  %v1233_v28 = vmul.f32 0.5, %v2421_v46  ;;  %v1417_v33 = vmul.f32 %v1321_v59, %v3623_v2 }
 0x1d5   :  { %v1511_v41 = vmul.f32 %v1415_v44, %v914_v47  ;;  %2195 = vmatprep.mubr.f32.mxu0 %v1509_v27  ;;  %v1324_v26 = vadd.f32 0.5, %v1228_v16  ;;  %v1231_v23 = vmul.f32 0.5, %v2415_v43  ;;  %v1421_v61 = vmul.f32 %v1325_v58, %v3624_v54 }
 0x1d6   :  { %v916_v8 = vpop.f32.mrf.mxu0  ;;  %v2425_v51 = vpop.eup %2424  ;;  %v1328_v50 = vadd.f32 0.5, %v1232_v9  ;;  %v1235_v3 = vmul.f32 0.5, %v2423_v24  ;;  %v1513_v17 = vmul.f32 %v1417_v33, %v3305_v40  ;;  %v1422_v44 = vmul.f32 %v1326_v34, %v3314_v39 }
 0x1d7   :  { %v1512_v12 = vmul.f32 %v1416_v32, %v916_v8  ;;  %1768 = vmatprep.mubr.f32.mxu1 %v1511_v41  ;;  %v2427_v31 = vpop.eup %2426  ;;  %v1329_v18 = vadd.f32 0.5, %v1233_v28  ;;  %v1236_v27 = vmul.f32 0.5, %v2425_v51  ;;  %v1420_v19 = vmul.f32 %v1324_v26, %v3625_v10 }
 0x1d8   :  { %v920_v36 = vpop.f32.mrf.mxu0  ;;  %1769 = vmatmul.mubr.f32.gmra.mxu1 %v1510_v0  ;;  %v2429_v60 = vpop.eup %2428  ;;  %v1327_v32 = vadd.f32 0.5, %v1231_v23  ;;  %v1234_v47 = vmul.f32 0.5, %v2427_v31  ;;  %v1424_v46 = vmul.f32 %v1328_v50, %v3607_v38  ;;  %v1331_v40 = vadd.f32 0.5, %v1235_v3 }
 0x1d9   :  { %v1514_v15 = vmul.f32 %v1418_v13, %v920_v36  ;;  %2196 = vmatmul.mubr.f32.gmra.mxu0 %v1512_v12  ;;  %v1238_v20 = vmul.f32 0.5, %v2429_v60  ;;  %v1516_v39 = vmul.f32 %v1420_v19, %v3324_v11  ;;  %v1425_v57 = vmul.f32 %v1329_v18, %v3331_v6 }
 0x1da   :  { %v922_v48 = vpop.f32.mrf.mxu0  ;;  %v2431_v43 = vpop.eup %2430  ;;  %v1332_v16 = vadd.f32 0.5, %v1236_v27  ;;  %v1423_v13 = vmul.f32 %v1327_v32, %v3601_v45  ;;  %v1330_v58 = vadd.f32 0.5, %v1234_v47  ;;  %v1427_v36 = vmul.f32 %v1331_v40, %v3609_v56 }
 0x1db   :  { %v1515_v5 = vmul.f32 %v1419_v4, %v922_v48  ;;  %1773 = vmatprep.mubr.f32.mxu1 %v1514_v15  ;;  %v2433_v30 = vpop.eup %2432  ;;  %v1239_v8 = vmul.f32 0.5, %v2431_v43  ;;  %v1334_v11 = vadd.f32 0.5, %v1238_v20 }
 0x1dc   :  { %v926_v62 = vpop.f32.mrf.mxu0  ;;  %1774 = vmatmul.mubr.f32.gmra.mxu1 %v1513_v17  ;;  %v2435_v7 = vpop.eup %2434  ;;  %v1237_v9 = vmul.f32 0.5, %v2433_v30  ;;  %v1519_v6 = vmul.f32 %v1423_v13, %v3338_v37  ;;  %v1428_v28 = vmul.f32 %v1332_v16, %v3354_v63  ;;  %v1426_v45 = vmul.f32 %v1330_v58, %v3610_v52 }
 0x1dd   :  { %v1517_v42 = vmul.f32 %v1421_v61, %v926_v62  ;;  %2198 = vmatprep.mubr.f32.mxu0 %v1515_v5  ;;  %v1241_v4 = vmul.f32 0.5, %v2435_v7  ;;  %v1335_v15 = vadd.f32 0.5, %v1239_v8  ;;  %v1430_v56 = vmul.f32 %v1334_v11, %v3612_v49 }
 0x1de   :  { %v928_v55 = vpop.f32.mrf.mxu0  ;;  %v2437_v29 = vpop.eup %2436  ;;  %v1333_v33 = vadd.f32 0.5, %v1237_v9  ;;  %v1522_v37 = vmul.f32 %v1426_v45, %v3365_v21 }
 0x1df   :  { %v1518_v41 = vmul.f32 %v1422_v44, %v928_v55  ;;  %1778 = vmatprep.mubr.f32.mxu1 %v1517_v42  ;;  %v2439_v38 = vpop.eup %2438  ;;  %v1242_v51 = vmul.f32 0.5, %v2437_v29  ;;  %v1337_v31 = vadd.f32 0.5, %v1241_v4  ;;  %v1431_v63 = vmul.f32 %v1335_v15, %v3373_v53  ;;  %v695_v44 = vpop.f32.mrf.mxu1 }
 0x1e0   :  { %v932_v59 = vpop.f32.mrf.mxu0  ;;  %1779 = vmatmul.mubr.f32.gmra.mxu1 %v1516_v39  ;;  %v1240_v26 = vmul.f32 0.5, %v2439_v38  ;;  %v1429_v50 = vmul.f32 %v1333_v33, %v3614_v14 }
 0x1e1   :  { %v1520_v12 = vmul.f32 %v1424_v46, %v932_v59  ;;  %2199 = vmatmul.mubr.f32.gmra.mxu0 %v1518_v41  ;;  %v1338_v54 = vadd.f32 0.5, %v1242_v51  ;;  %v1433_v17 = vmul.f32 %v1337_v31, %v3615_v35 }
 0x1e2   :  { %v934_v24 = vpop.f32.mrf.mxu0  ;;  %v1336_v52 = vadd.f32 0.5, %v1240_v26  ;;  %v1525_v49 = vmul.f32 %v1429_v50, %v3383_v22 }
 0x1e3   :  { %v1521_v0 = vmul.f32 %v1425_v57, %v934_v24  ;;  %1783 = vmatprep.mubr.f32.mxu1 %v1520_v12  ;;  %v1434_v21 = vmul.f32 %v1338_v54, %v3395_v1 }
 0x1e4   :  { %v938_v34 = vpop.f32.mrf.mxu0  ;;  %1784 = vmatmul.mubr.f32.gmra.mxu1 %v1519_v6  ;;  %v1432_v53 = vmul.f32 %v1336_v52, %v3618_v25 }
 0x1e5   :  { %v1523_v2 = vmul.f32 %v1427_v36, %v938_v34  ;;  %2201 = vmatprep.mubr.f32.mxu0 %v1521_v0 }
 0x1e6   :  { %v940_v23 = vpop.f32.mrf.mxu0  ;;  %v1528_v42 = vmul.f32 %v1432_v53, %v695_v44 }
 0x1e7   :  { %v1524_v48 = vmul.f32 %v1428_v28, %v940_v23  ;;  %1788 = vmatprep.mubr.f32.mxu1 %v1523_v2 }
 0x1e8   :  { %v944_v5 = vpop.f32.mrf.mxu0  ;;  %1789 = vmatmul.mubr.f32.gmra.mxu1 %v1522_v37 }
 0x1e9   :  { %v1526_v61 = vmul.f32 %v1430_v56, %v944_v5  ;;  %2202 = vmatmul.mubr.f32.gmra.mxu0 %v1524_v48 }
 0x1ea   :  { %v946_v3 = vpop.f32.mrf.mxu0 }
 0x1eb   :  { %v1527_v60 = vmul.f32 %v1431_v63, %v946_v3  ;;  %1793 = vmatprep.mubr.f32.mxu1 %v1526_v61 }
 0x1ec   :  { %v950_v62 = vpop.f32.mrf.mxu0  ;;  %1794 = vmatmul.mubr.f32.gmra.mxu1 %v1525_v49 }
 0x1ed   :  { %v1529_v18 = vmul.f32 %v1433_v17, %v950_v62  ;;  %2204 = vmatprep.mubr.f32.mxu0 %v1527_v60 }
 0x1ee   :  { %v952_v27 = vpop.f32.mrf.mxu0 }
 0x1ef   :  { %v1530_v14 = vmul.f32 %v1434_v21, %v952_v27  ;;  %1798 = vmatprep.mubr.f32.mxu1 %v1529_v18 }
 0x1f0   :  { %1799 = vmatmul.mubr.f32.gmra.mxu1 %v1528_v42 }
 0x1f1   :  { %2205 = vmatmul.mubr.f32.gmra.mxu0 %v1530_v14 }
 0x234   :  { %v1645_v43 = vpop.f32.mrf.mxu1 }
 0x236   :  { %v1647_v10 = vpop.f32.mrf.mxu1 }
 0x238   :  { %v1650_v35 = vpop.f32.mrf.mxu1 }
 0x239   :  { %v2161_v19 = vpop.f32.mrf.mxu0 }
 0x23a   :  { %v1876_v22 = vadd.f32 %v2161_v19, %v1650_v35  ;;  %v1652_v32 = vpop.f32.mrf.mxu1 }
 0x23b   :  { %v1870_v47 = vpop.f32.mrf.mxu0 }
 0x23c   :  { %2030 = vst [vmem:[#allocation8 + $0x8] sm:$0xff] %v1876_v22  ;;  %v1871_v1 = vadd.f32 %v1870_v47, %v1645_v43  ;;  %v1655_v55 = vpop.f32.mrf.mxu1 }
 0x23e   :  { %2029 = vst [vmem:[#allocation8] sm:$0xff] %v1871_v1  ;;  %v1657_v30 = vpop.f32.mrf.mxu1 }
 0x240   :  { %v1660_v25 = vpop.f32.mrf.mxu1 }
 0x241   :  { %v2164_v41 = vpop.f32.mrf.mxu0 }
 0x242   :  { %v1886_v46 = vadd.f32 %v2164_v41, %v1660_v25  ;;  %v1662_v40 = vpop.f32.mrf.mxu1 }
 0x243   :  { %v1880_v20 = vpop.f32.mrf.mxu0 }
 0x244   :  { %2032 = vst [vmem:[#allocation8 + $0x18] sm:$0xff] %v1886_v46  ;;  %v1881_v7 = vadd.f32 %v1880_v20, %v1655_v55  ;;  %v1665_v39 = vpop.f32.mrf.mxu1 }
 0x246   :  { %2031 = vst [vmem:[#allocation8 + $0x10] sm:$0xff] %v1881_v7  ;;  %v1667_v59 = vpop.f32.mrf.mxu1 }
 0x248   :  { %v1670_v16 = vpop.f32.mrf.mxu1 }
 0x249   :  { %v2167_v57 = vpop.f32.mrf.mxu0 }
 0x24a   :  { %v1896_v8 = vadd.f32 %v2167_v57, %v1670_v16  ;;  %v1672_v29 = vpop.f32.mrf.mxu1 }
 0x24b   :  { %v1890_v12 = vpop.f32.mrf.mxu0 }
 0x24c   :  { %v1891_v13 = vadd.f32 %v1890_v12, %v1665_v39  ;;  %2034 = vst [vmem:[#allocation8 + $0x28] sm:$0xff] %v1896_v8  ;;  %v1675_v58 = vpop.f32.mrf.mxu1 }
 0x24e   :  { %2033 = vst [vmem:[#allocation8 + $0x20] sm:$0xff] %v1891_v13  ;;  %v1677_v9 = vpop.f32.mrf.mxu1 }
 0x250   :  { %v1680_v38 = vpop.f32.mrf.mxu1 }
 0x251   :  { %v2170_v24 = vpop.f32.mrf.mxu0 }
 0x252   :  { %v1906_v0 = vadd.f32 %v2170_v24, %v1680_v38  ;;  %v1682_v11 = vpop.f32.mrf.mxu1 }
 0x253   :  { %v1900_v36 = vpop.f32.mrf.mxu0 }
 0x254   :  { %v1901_v4 = vadd.f32 %v1900_v36, %v1675_v58  ;;  %2036 = vst [vmem:[#allocation8 + $0x38] sm:$0xff] %v1906_v0  ;;  %v1685_v6 = vpop.f32.mrf.mxu1 }
 0x256   :  { %2035 = vst [vmem:[#allocation8 + $0x30] sm:$0xff] %v1901_v4  ;;  %v1687_v34 = vpop.f32.mrf.mxu1 }
 0x258   :  { %v1690_v15 = vpop.f32.mrf.mxu1 }
 0x259   :  { %v2173_v28 = vpop.f32.mrf.mxu0 }
 0x25a   :  { %v1916_v51 = vadd.f32 %v2173_v28, %v1690_v15  ;;  %v1692_v45 = vpop.f32.mrf.mxu1 }
 0x25b   :  { %v1910_v2 = vpop.f32.mrf.mxu0 }
 0x25c   :  { %v1911_v33 = vadd.f32 %v1910_v2, %v1685_v6  ;;  %2038 = vst [vmem:[#allocation8 + $0x48] sm:$0xff] %v1916_v51  ;;  %v1695_v26 = vpop.f32.mrf.mxu1 }
 0x25e   :  { %2037 = vst [vmem:[#allocation8 + $0x40] sm:$0xff] %v1911_v33  ;;  %v1697_v23 = vpop.f32.mrf.mxu1 }
 0x260   :  { %v1700_v56 = vpop.f32.mrf.mxu1 }
 0x261   :  { %v2176_v48 = vpop.f32.mrf.mxu0 }
 0x262   :  { %v1926_v31 = vadd.f32 %v2176_v48, %v1700_v56  ;;  %v1702_v5 = vpop.f32.mrf.mxu1 }
 0x263   :  { %v1920_v37 = vpop.f32.mrf.mxu0 }
 0x264   :  { %v1921_v63 = vadd.f32 %v1920_v37, %v1695_v26  ;;  %2040 = vst [vmem:[#allocation8 + $0x58] sm:$0xff] %v1926_v31  ;;  %v1705_v54 = vpop.f32.mrf.mxu1 }
 0x266   :  { %2039 = vst [vmem:[#allocation8 + $0x50] sm:$0xff] %v1921_v63  ;;  %v1707_v61 = vpop.f32.mrf.mxu1 }
 0x268   :  { %v1710_v52 = vpop.f32.mrf.mxu1 }
 0x269   :  { %v2179_v50 = vpop.f32.mrf.mxu0 }
 0x26a   :  { %v1936_v3 = vadd.f32 %v2179_v50, %v1710_v52  ;;  %v1712_v17 = vpop.f32.mrf.mxu1 }
 0x26b   :  { %v1930_v60 = vpop.f32.mrf.mxu0 }
 0x26c   :  { %v1931_v49 = vadd.f32 %v1930_v60, %v1705_v54  ;;  %2042 = vst [vmem:[#allocation8 + $0x68] sm:$0xff] %v1936_v3  ;;  %v1715_v62 = vpop.f32.mrf.mxu1 }
 0x26e   :  { %2041 = vst [vmem:[#allocation8 + $0x60] sm:$0xff] %v1931_v49  ;;  %v1717_v21 = vpop.f32.mrf.mxu1 }
 0x270   :  { %v1720_v18 = vpop.f32.mrf.mxu1 }
 0x271   :  { %v2182_v44 = vpop.f32.mrf.mxu0 }
 0x272   :  { %v1946_v53 = vadd.f32 %v2182_v44, %v1720_v18  ;;  %v1722_v14 = vpop.f32.mrf.mxu1 }
 0x273   :  { %v1940_v27 = vpop.f32.mrf.mxu0 }
 0x274   :  { %v1941_v42 = vadd.f32 %v1940_v27, %v1715_v62  ;;  %2044 = vst [vmem:[#allocation8 + $0x78] sm:$0xff] %v1946_v53  ;;  %v1725_v43 = vpop.f32.mrf.mxu1 }
 0x276   :  { %2043 = vst [vmem:[#allocation8 + $0x70] sm:$0xff] %v1941_v42  ;;  %v1727_v10 = vpop.f32.mrf.mxu1 }
 0x278   :  { %v1730_v19 = vpop.f32.mrf.mxu1 }
 0x279   :  { %v2185_v35 = vpop.f32.mrf.mxu0 }
 0x27a   :  { %v1956_v22 = vadd.f32 %v2185_v35, %v1730_v19  ;;  %v1732_v47 = vpop.f32.mrf.mxu1 }
 0x27b   :  { %v1950_v32 = vpop.f32.mrf.mxu0 }
 0x27c   :  { %v1951_v1 = vadd.f32 %v1950_v32, %v1725_v43  ;;  %2046 = vst [vmem:[#allocation8 + $0x88] sm:$0xff] %v1956_v22  ;;  %v1735_v55 = vpop.f32.mrf.mxu1 }
 0x27e   :  { %2045 = vst [vmem:[#allocation8 + $0x80] sm:$0xff] %v1951_v1  ;;  %v1737_v30 = vpop.f32.mrf.mxu1 }
 0x280   :  { %v1740_v41 = vpop.f32.mrf.mxu1 }
 0x281   :  { %v2188_v25 = vpop.f32.mrf.mxu0 }
 0x282   :  { %v1966_v46 = vadd.f32 %v2188_v25, %v1740_v41  ;;  %v1742_v20 = vpop.f32.mrf.mxu1 }
 0x283   :  { %v1960_v40 = vpop.f32.mrf.mxu0 }
 0x284   :  { %v1961_v7 = vadd.f32 %v1960_v40, %v1735_v55  ;;  %2048 = vst [vmem:[#allocation8 + $0x98] sm:$0xff] %v1966_v46  ;;  %v1745_v39 = vpop.f32.mrf.mxu1 }
 0x286   :  { %2047 = vst [vmem:[#allocation8 + $0x90] sm:$0xff] %v1961_v7  ;;  %v1747_v59 = vpop.f32.mrf.mxu1 }
 0x288   :  { %v1750_v16 = vpop.f32.mrf.mxu1 }
 0x289   :  { %v2191_v57 = vpop.f32.mrf.mxu0 }
 0x28a   :  { %v1976_v8 = vadd.f32 %v2191_v57, %v1750_v16  ;;  %v1752_v29 = vpop.f32.mrf.mxu1 }
 0x28b   :  { %v1970_v12 = vpop.f32.mrf.mxu0 }
 0x28c   :  { %v1971_v13 = vadd.f32 %v1970_v12, %v1745_v39  ;;  %2050 = vst [vmem:[#allocation8 + $0xa8] sm:$0xff] %v1976_v8  ;;  %v1755_v58 = vpop.f32.mrf.mxu1 }
 0x28e   :  { %2049 = vst [vmem:[#allocation8 + $0xa0] sm:$0xff] %v1971_v13  ;;  %v1757_v9 = vpop.f32.mrf.mxu1 }
 0x290   :  { %v1760_v38 = vpop.f32.mrf.mxu1 }
 0x291   :  { %v2194_v24 = vpop.f32.mrf.mxu0 }
 0x292   :  { %v1986_v0 = vadd.f32 %v2194_v24, %v1760_v38  ;;  %v1762_v11 = vpop.f32.mrf.mxu1 }
 0x293   :  { %v1980_v36 = vpop.f32.mrf.mxu0 }
 0x294   :  { %v1981_v4 = vadd.f32 %v1980_v36, %v1755_v58  ;;  %2052 = vst [vmem:[#allocation8 + $0xb8] sm:$0xff] %v1986_v0  ;;  %v1765_v6 = vpop.f32.mrf.mxu1 }
 0x296   :  { %2051 = vst [vmem:[#allocation8 + $0xb0] sm:$0xff] %v1981_v4  ;;  %v1767_v34 = vpop.f32.mrf.mxu1 }
 0x298   :  { %v1770_v15 = vpop.f32.mrf.mxu1 }
 0x299   :  { %v2197_v28 = vpop.f32.mrf.mxu0 }
 0x29a   :  { %v1996_v51 = vadd.f32 %v2197_v28, %v1770_v15  ;;  %v1772_v45 = vpop.f32.mrf.mxu1 }
 0x29b   :  { %v1990_v2 = vpop.f32.mrf.mxu0 }
 0x29c   :  { %v1991_v33 = vadd.f32 %v1990_v2, %v1765_v6  ;;  %2054 = vst [vmem:[#allocation8 + $0xc8] sm:$0xff] %v1996_v51  ;;  %v1775_v26 = vpop.f32.mrf.mxu1 }
 0x29e   :  { %2053 = vst [vmem:[#allocation8 + $0xc0] sm:$0xff] %v1991_v33  ;;  %v1777_v23 = vpop.f32.mrf.mxu1 }
 0x2a0   :  { %v1780_v56 = vpop.f32.mrf.mxu1 }
 0x2a1   :  { %v2200_v48 = vpop.f32.mrf.mxu0 }
 0x2a2   :  { %v2006_v31 = vadd.f32 %v2200_v48, %v1780_v56  ;;  %v1782_v5 = vpop.f32.mrf.mxu1 }
 0x2a3   :  { %v2000_v37 = vpop.f32.mrf.mxu0 }
 0x2a4   :  { %v2001_v63 = vadd.f32 %v2000_v37, %v1775_v26  ;;  %2056 = vst [vmem:[#allocation8 + $0xd8] sm:$0xff] %v2006_v31  ;;  %v1785_v54 = vpop.f32.mrf.mxu1 }
 0x2a6   :  { %2055 = vst [vmem:[#allocation8 + $0xd0] sm:$0xff] %v2001_v63  ;;  %v1787_v61 = vpop.f32.mrf.mxu1 }
 0x2a8   :  { %v1790_v52 = vpop.f32.mrf.mxu1 }
 0x2a9   :  { %v2203_v50 = vpop.f32.mrf.mxu0 }
 0x2aa   :  { %v2016_v3 = vadd.f32 %v2203_v50, %v1790_v52  ;;  %v1792_v17 = vpop.f32.mrf.mxu1 }
 0x2ab   :  { %v2010_v60 = vpop.f32.mrf.mxu0 }
 0x2ac   :  { %v2011_v49 = vadd.f32 %v2010_v60, %v1785_v54  ;;  %2058 = vst [vmem:[#allocation8 + $0xe8] sm:$0xff] %v2016_v3  ;;  %v1795_v62 = vpop.f32.mrf.mxu1 }
 0x2ae   :  { %2057 = vst [vmem:[#allocation8 + $0xe0] sm:$0xff] %v2011_v49  ;;  %v1797_v21 = vpop.f32.mrf.mxu1 }
 0x2b0   :  { %v1800_v18 = vpop.f32.mrf.mxu1 }
 0x2b1   :  { %v2206_v44 = vpop.f32.mrf.mxu0 }
 0x2b2   :  { %v2026_v53 = vadd.f32 %v2206_v44, %v1800_v18  ;;  %v1802_v14 = vpop.f32.mrf.mxu1 }
 0x2b3   :  { %v2020_v27 = vpop.f32.mrf.mxu0 }
 0x2b4   :  { %v2021_v42 = vadd.f32 %v2020_v27, %v1795_v62  ;;  %2060 = vst [vmem:[#allocation8 + $0xf8] sm:$0xff] %v2026_v53 }
 0x2b6   :  { %2059 = vst [vmem:[#allocation8 + $0xf0] sm:$0xff] %v2021_v42 }
 0x2b7   :  { %2511 = shalt.err (!%p2508_p5)
}
 0x2b8   :  { %2072 = dma.vmem_to_hbm [thread:$0]  %s2067_s2, 4096, %s3440_s3, [#allocation4], %s2530_s22, %s2530_s22, %s2531_s23  }
 0x2b9   :  { %2524 = dma.done.wait [#allocation4], 4096  }
 0x2ba   :  { %2525 = vsyncadd [#allocation4], 4294963200 }
 0x2bb   :  { %2076 = vsyncpa [#allocation3], 1 }
 0x2bc   :  { %2077 = vsyncpa [#allocation6], 1 }
 0x2bd   :  { %2078 = vsyncpa [#allocation4], 1 }

</bundles_post_ra>
